<compile_context>
chip_gen: v6e
topology: v6e:2x2x1
jax: 0.10.0
libtpu: 0.0.40
codegen_flags: <defaults>
</compile_context>

<pallas_src>
import math
from fractions import Fraction

import numpy as np
import jax
import jax.numpy as jnp
from jax.experimental import pallas as pl
from jax.experimental.pallas import tpu as pltpu


# ---------------------------------------------------------------------------
# Host-side (numpy) construction of the generalized Clebsch-Gordan "U" tensors.
# Faithful port of e3nn wigner_3j / _wigner_nj / U_matrix_real (real spherical
# harmonics, 'component' normalization).  These are constant buffers.
# ---------------------------------------------------------------------------
def _su2_cg_coeff(idx1, idx2, idx3):
    j1, m1 = idx1
    j2, m2 = idx2
    j3, m3 = idx3
    if m3 != m1 + m2:
        return 0.0
    vmin = int(max([-j1 + j2 + m3, -j1 + m1, 0]))
    vmax = int(min([j2 + j3 + m1, j3 - j1 + j2, j3 + m3]))

    def f(n):
        return math.factorial(round(n))

    C = ((2.0 * j3 + 1.0) * Fraction(
        f(j3 + j1 - j2) * f(j3 - j1 + j2) * f(j1 + j2 - j3) * f(j3 + m3) * f(j3 - m3),
        f(j1 + j2 + j3 + 1) * f(j1 - m1) * f(j1 + m1) * f(j2 - m2) * f(j2 + m2),
    )) ** 0.5
    S = 0
    for v in range(vmin, vmax + 1):
        S += (-1) ** int(v + j2 + m2) * Fraction(
            f(j2 + j3 + m1 - v) * f(j1 - m1 + v),
            f(v) * f(j3 - j1 + j2 - v) * f(j3 + m3 - v) * f(j1 - j2 - m3 + v),
        )
    return float(C * S)


def _su2_clebsch_gordan(j1, j2, j3):
    mat = np.zeros((int(2 * j1 + 1), int(2 * j2 + 1), int(2 * j3 + 1)), dtype=np.float64)
    if int(2 * j3) in range(int(2 * abs(j1 - j2)), int(2 * (j1 + j2)) + 1, 2):
        for m1 in [x / 2 for x in range(-int(2 * j1), int(2 * j1) + 1, 2)]:
            for m2 in [x / 2 for x in range(-int(2 * j2), int(2 * j2) + 1, 2)]:
                if abs(m1 + m2) <= j3:
                    mat[int(j1 + m1), int(j2 + m2), int(j3 + m1 + m2)] = _su2_cg_coeff(
                        (j1, m1), (j2, m2), (j3, m1 + m2))
    return mat


def _change_basis_real_to_complex(l):
    q = np.zeros((2 * l + 1, 2 * l + 1), dtype=np.complex128)
    for m in range(-l, 0):
        q[l + m, l + abs(m)] = 1 / 2 ** 0.5
        q[l + m, l - abs(m)] = -1j / 2 ** 0.5
    q[l, l] = 1.0
    for m in range(1, l + 1):
        q[l + m, l + abs(m)] = (-1) ** m / 2 ** 0.5
        q[l + m, l - abs(m)] = 1j * (-1) ** m / 2 ** 0.5
    return (-1j) ** l * q


def wigner_3j(l1, l2, l3):
    C = _su2_clebsch_gordan(l1, l2, l3).astype(np.complex128)
    Q1 = _change_basis_real_to_complex(l1)
    Q2 = _change_basis_real_to_complex(l2)
    Q3 = _change_basis_real_to_complex(l3)
    C = np.einsum('ij,kl,mn,ikn->jlm', Q1, Q2, np.conj(Q3.T), C)
    assert np.abs(C.imag).max() < 1e-8
    C = C.real
    n = np.linalg.norm(C)
    return C / n if n > 0 else C


# irreps are lists of (mul, (l, p))
def _ir_dim(ir):
    return 2 * ir[0] + 1


def _irreps_dim(irreps):
    return sum(mul * _ir_dim(ir) for mul, ir in irreps)


def _ir_mul(ir1, ir2):
    (l1, p1), (l2, p2) = ir1, ir2
    return [(l, p1 * p2) for l in range(abs(l1 - l2), l1 + l2 + 1)]


def _wigner_nj(irrepss, normalization='component', filter_ir_mid=None):
    if len(irrepss) == 1:
        irreps = irrepss[0]
        ret = []
        e = np.eye(_irreps_dim(irreps), dtype=np.float64)
        i = 0
        for mul, ir in irreps:
            for _ in range(mul):
                sl = slice(i, i + _ir_dim(ir))
                ret.append((ir, e[sl]))
                i += _ir_dim(ir)
        return ret
    *irrepss_left, irreps_right = irrepss
    ret = []
    for ir_left, C_left in _wigner_nj(irrepss_left, normalization, filter_ir_mid):
        i = 0
        for mul, ir in irreps_right:
            for ir_out in _ir_mul(ir_left, ir):
                if filter_ir_mid is not None and ir_out not in filter_ir_mid:
                    continue
                C = wigner_3j(ir_out[0], ir_left[0], ir[0])
                if normalization == 'component':
                    C = C * _ir_dim(ir_out) ** 0.5
                if normalization == 'norm':
                    C = C * (_ir_dim(ir_left) ** 0.5 * _ir_dim(ir) ** 0.5)
                C = np.einsum('jk,ijl->ikl', C_left.reshape(C_left.shape[0], -1), C)
                C = C.reshape(_ir_dim(ir_out),
                              *(_irreps_dim(irr) for irr in irrepss_left),
                              _ir_dim(ir))
                for u in range(mul):
                    E = np.zeros((_ir_dim(ir_out),
                                  *(_irreps_dim(irr) for irr in irrepss_left),
                                  _irreps_dim(irreps_right)), dtype=np.float64)
                    sl = slice(i + u * _ir_dim(ir), i + (u + 1) * _ir_dim(ir))
                    E[..., sl] = C
                    ret.append((ir_out, E))
            i += mul * _ir_dim(ir)
    return sorted(ret, key=lambda x: (x[0][0], x[0][1]))


def U_matrix_real(irreps_in, irreps_out, correlation, normalization='component'):
    irrepss = [list(irreps_in)] * correlation
    filter_ir_mid = None
    if correlation == 4:
        filter_ir_mid = [(l, (-1) ** l) for l in range(12)]
    wigners = _wigner_nj(irrepss, normalization, filter_ir_mid)
    out_irs = [ir for _, ir in irreps_out]
    current_ir = wigners[0][0]
    out = []
    stack = None
    last_ir = None
    for ir, base_o3 in wigners:
        if ir in out_irs and ir == current_ir:
            b = np.expand_dims(np.squeeze(base_o3), -1)
            stack = b if stack is None else np.concatenate([stack, b], axis=-1)
            last_ir = current_ir
        elif ir in out_irs and ir != current_ir:
            if stack is not None and stack.size != 0:
                out += [last_ir, stack]
            stack = np.expand_dims(np.squeeze(base_o3), -1)
            current_ir, last_ir = ir, ir
        else:
            current_ir = ir
    out += [last_ir, stack]
    return out


# ---------------------------------------------------------------------------
# Pallas kernel.
#   rows  = nodes (Bt per tile), everything 2D, channel-innermost lanes.
#   Per (block, correlation-order) slab layout: (j_nu, ..., j_1, m, c).
#
#   xtiles[d]  : x[b, c=lane%C, d] tiled to the max segment width (C VPU FMAs, no MXU)
#   slab       : sum_e y[:, e] * V[e, slab]        (E VPU FMAs, streamed from the vsel ref)
#   recursion  : cur = cur + slab ; cur = tree-sum over d of cur[d-seg] * xtiles[d][:seg]
#   output     : one stacked-G MXU matmul (K_tot -> T, e3nn (c, m) layout) + sc
# ---------------------------------------------------------------------------
def _make_kernel(correlation, C, D, E, block_meta, k_offs, k_tot):
    # Contraction depths are tiny (E=3, D=4, K_tot=16) -> f32 HIGHEST for tight validation.
    # Production knob on v6e/v7x: bf16 slabs/constants + Precision.DEFAULT.
    hp = jax.lax.Precision.HIGHEST

    def kernel(x_ref, y_ref, sc_ref, vsel_ref, cmask_ref, g_ref, o_ref, lhs_ref):
        # --- hoisted per grid step -----------------------------------------
        # one-hot element weights, one (Bt, 1) column per element
        y_cols = [y_ref[:, e:e + 1] for e in range(E)]

        # xtiles[d][b, l] = x[b, c = l % C, j = d]; max width covers every level's
        # segment as a prefix (channel-innermost pattern has period C).
        # At production C (multiple of 128) replace with an aligned reshape+broadcast.
        xtiles = []
        for d in range(D):
            t = None
            for c in range(C):
                # x_ref lanes are c-major: column (c, j=d) lives at c*D + d
                col = x_ref[:, c * D + d: c * D + d + 1]            # (Bt, 1)
                term = col * cmask_ref[c:c + 1, :]                  # (Bt, seg_max)
                t = term if t is None else t + term
            xtiles.append(t)

        # --- per target-irrep block: weighted basis select + recursion -----
        for t_idx, meta in enumerate(block_meta):
            M = meta['M']
            cur = None
            for nu in range(correlation, 0, -1):
                off = meta['off'][nu]
                width = (D ** nu) * M * C
                # element-dependent weighted basis slab (streamed, never full-width)
                slab = None
                for e in range(E):
                    term = y_cols[e] * vsel_ref[e:e + 1, off:off + width]
                    slab = term if slab is None else slab + term
                cur = slab if cur is None else cur + slab
                # contract outer coupling index j_nu against x[b, c, j_nu]
                seg = width // D
                parts = [cur[:, d * seg:(d + 1) * seg] * xtiles[d][:, :seg]
                         for d in range(D)]
                while len(parts) > 1:                               # pairwise tree sum
                    nxt = [parts[i] + parts[i + 1] for i in range(0, len(parts) - 1, 2)]
                    if len(parts) % 2:
                        nxt.append(parts[-1])
                    parts = nxt
                cur = parts[0]                  # (Bt, seg) lanes (j_{nu-1},...,j_1,m,c)
            # pack this block's (m, c) features into the stacked-matmul LHS
            lhs_ref[:, k_offs[t_idx]:k_offs[t_idx] + M * C] = cur

        # --- fused o3.Linear channel mix + scatter into e3nn (c, m) layout + skip ---
        o_ref[...] = (sc_ref[...] +
                      jnp.dot(lhs_ref[...], g_ref[...],
                              preferred_element_type=jnp.float32, precision=hp)
                      ).astype(o_ref.dtype)

    return kernel


def equivariant_product_basis_block(node_feats, node_attrs, sc, params, node_tile=None):
    B, C, D = node_feats.shape
    E = node_attrs.shape[1]
    T = params['T']
    correlation = params['correlation']
    block_meta = params['block_meta']
    k_offs, k_tot = params['k_offs'], params['k_tot']
    vsel, cmask, gstack = params['vsel'], params['cmask'], params['gstack']
    w_sel = vsel.shape[1]
    seg_max = cmask.shape[1]

    if node_tile is None:
        # >= 2 grid steps whenever possible so v7x's two TensorCores both get work;
        # on v5e/v6e sweep this upward (512+) once HBM-bound.
        half = (B + 1) // 2
        node_tile = min(512, max(8, ((half + 7) // 8) * 8))
    assert node_tile % 8 == 0, "node_tile must be a multiple of 8 (sublane)"
    n_tiles = int(pl.cdiv(B, node_tile))

    # No host-side padding: ragged last tile handled by Pallas partial-block semantics
    # (all math is row-local; out-of-bounds rows are dropped on the masked store).
    x_flat = node_feats.reshape(B, C * D)        # lanes (c, j), c-major (no data movement)

    flops = int(B * (2 * E * w_sel + 2 * C * D * seg_max + 4 * w_sel + 2 * k_tot * T))
    bytes_accessed = int(4 * (B * (C * D + E + 2 * T)
                              + vsel.size + cmask.size + gstack.size))
    cost = pl.CostEstimate(flops=flops, transcendentals=0, bytes_accessed=bytes_accessed)

    in_specs = [
        pl.BlockSpec((node_tile, C * D), lambda i: (i, 0)),   # node features (c-major)
        pl.BlockSpec((node_tile, E), lambda i: (i, 0)),       # one-hot element attrs
        pl.BlockSpec((node_tile, T), lambda i: (i, 0)),       # skip connection (e3nn layout)
        pl.BlockSpec(vsel.shape, lambda i: (0, 0)),           # V = sum_k U W (constant)
        pl.BlockSpec(cmask.shape, lambda i: (0, 0)),          # 0/1 channel lane mask (constant)
        pl.BlockSpec(gstack.shape, lambda i: (0, 0)),         # stacked linear mix+scatter (constant)
    ]

    out = pl.pallas_call(
        _make_kernel(correlation, C, D, E, block_meta, k_offs, k_tot),
        out_shape=jax.ShapeDtypeStruct((B, T), jnp.float32),
        grid=(n_tiles,),
        in_specs=in_specs,
        out_specs=pl.BlockSpec((node_tile, T), lambda i: (i, 0)),
        scratch_shapes=[pltpu.VMEM((node_tile, k_tot), jnp.float32)],
        compiler_params=pltpu.CompilerParams(
            dimension_semantics=("parallel",),
            vmem_limit_bytes=32 * 1024 * 1024,   # explicit scoped budget (safe on v5e..v7x)
        ),
        cost_estimate=cost,
    )(x_flat, node_attrs, sc, vsel, cmask, gstack)
    return out


# ---------------------------------------------------------------------------
# Deterministic parameter init + host precompute of the grid-invariant constants.
#   vsel   (E, W_sel)      : vsel[e, (block,nu) slab] = sum_k U_nu[...,k] W_nu[e,k,c]
#                            flattened as (j_nu, ..., j_1, m, c)   [channel innermost]
#   cmask  (C, seg_max)    : 0/1 lane mask, cmask[c, l] = 1 iff l % C == c (for the in-kernel
#                            broadcast of x across a slab; no rexp matmul anymore)
#   gstack (K_tot, T)      : all blocks' (C,C) o3.Linear mixes (1/sqrt(C) path norm) stacked
#                            and scattered into the e3nn (c, m) output layout
# ---------------------------------------------------------------------------
def init_params(key, C, D, E, correlation, coupling_irreps, target_irreps):
    Ms = [2 * ir[0] + 1 for _, ir in target_irreps]
    T = C * sum(Ms)
    keys = jax.random.split(key, len(target_irreps) * (correlation + 1))
    kidx = 0

    vsel_cols, g_list = [], []
    block_meta, raw, k_offs = [], [], []
    off = 0
    out_off = 0
    k_off = 0
    for (_, ir) in target_irreps:
        M = 2 * ir[0] + 1
        offs, U_raw, W_raw = {}, {}, {}
        for nu in range(correlation, 0, -1):
            stack = U_matrix_real(coupling_irreps, [(1, ir)], nu)[-1]
            K = int(stack.shape[-1])
            U = stack.reshape(M, *([D] * nu), K).astype(np.float64)      # (M, D..D, K)
            U_raw[nu] = U.astype(np.float32)
            W = jax.random.normal(keys[kidx], (E, K, C), dtype=jnp.float32) / K
            kidx += 1
            W_raw[nu] = W
            w_np = np.asarray(W, dtype=np.float64)

            # V[e, m, j1..jnu, c] -> (e, j_nu, ..., j_1, m, c) flattened, channel innermost
            V = np.einsum('...k,ekc->e...c', U, w_np)
            perm = (0,) + tuple(range(nu + 1, 1, -1)) + (1, nu + 2)
            Vt = np.transpose(V, perm).reshape(E, (D ** nu) * M * C)
            vsel_cols.append(Vt)

            offs[nu] = off
            off += (D ** nu) * M * C

        LW = jax.random.normal(keys[kidx], (C, C), dtype=jnp.float32)
        kidx += 1
        lw = np.asarray(LW, dtype=np.float64)
        G = np.zeros((M * C, T), dtype=np.float64)
        for m in range(M):
            for c in range(C):
                for cp in range(C):
                    G[m * C + c, out_off + cp * M + m] = lw[c, cp] / math.sqrt(C)
        g_list.append(G)
        k_offs.append(k_off)
        k_off += M * C

        block_meta.append(dict(M=M, off=offs))
        raw.append(dict(M=M, U=U_raw, W=W_raw, LW=LW))
        out_off += C * M

    vsel = jnp.asarray(np.concatenate(vsel_cols, axis=1), dtype=jnp.float32)
    gstack = jnp.asarray(np.concatenate(g_list, axis=0), dtype=jnp.float32)

    seg_max = (D ** (correlation - 1)) * max(Ms) * C
    cm = np.zeros((C, seg_max), dtype=np.float32)
    lanes = np.arange(seg_max)
    for c in range(C):
        cm[c, lanes % C == c] = 1.0
    cmask = jnp.asarray(cm)

    return dict(vsel=vsel, cmask=cmask, gstack=gstack, block_meta=block_meta, raw=raw,
                T=T, correlation=correlation, k_offs=k_offs, k_tot=k_off)


# plain-JAX reference mirroring the torch einsum equations (for validation only)
def reference_forward(node_feats, node_attrs, sc, params, correlation, C):
    hp = jax.lax.Precision.HIGHEST
    outs = []
    for blk in params['raw']:
        M = blk['M']
        U = {nu: jnp.asarray(blk['U'][nu]) for nu in blk['U']}
        W = blk['W']
        x, y = node_feats, node_attrs
        out = jnp.einsum('...ik,ekc,bci,be->bc...', U[correlation], W[correlation], x, y,
                         precision=hp)
        for nu in range(correlation - 1, 0, -1):
            c_t = jnp.einsum('...k,ekc,be->bc...', U[nu], W[nu], y, precision=hp)
            out = jnp.einsum('bc...i,bci->bc...', c_t + out, x, precision=hp)
        feat = out.reshape(out.shape[0], C, M)
        z = jnp.einsum('uw,bum->bwm', blk['LW'], feat, precision=hp) / math.sqrt(C)
        outs.append(z.reshape(z.shape[0], C * M))
    return jnp.concatenate(outs, axis=-1) + sc


if __name__ == "__main__":
    C = 4                                            # multiplicity / num_features
    coupling_irreps = [(1, (0, 1)), (1, (1, -1))]    # "1x0e + 1x1o"  -> D = 4
    target_irreps = [(C, (0, 1)), (C, (1, -1))]      # "4x0e + 4x1o"  -> T = 16
    D = sum(2 * ir[0] + 1 for _, ir in coupling_irreps)
    E = 3                                            # num_elements
    correlation = 3
    B = 16                                           # nodes

    key = jax.random.PRNGKey(0)
    k_param, k_x, k_attr, k_sc = jax.random.split(key, 4)

    params = init_params(k_param, C, D, E, correlation, coupling_irreps, target_irreps)
    T = params['T']

    node_feats = jax.random.normal(k_x, (B, C, D), dtype=jnp.float32)
    node_attrs = jax.nn.one_hot(jax.random.randint(k_attr, (B,), 0, E), E, dtype=jnp.float32)
    sc = jax.random.normal(k_sc, (B, T), dtype=jnp.float32)

    ref = jax.block_until_ready(
        reference_forward(node_feats, node_attrs, sc, params, correlation, C))

    # 1) default: >= 2 grid steps (8-row tiles), whole forward fused in one pallas_call
    out = jax.block_until_ready(
        equivariant_product_basis_block(node_feats, node_attrs, sc, params))
    assert out.shape == (B, T), out.shape
    np.testing.assert_allclose(np.asarray(out), np.asarray(ref), atol=1e-3, rtol=1e-3)

    # 2) single grid-step path (tile = whole batch)
    out_t = jax.block_until_ready(
        equivariant_product_basis_block(node_feats, node_attrs, sc, params, node_tile=16))
    np.testing.assert_allclose(np.asarray(out_t), np.asarray(ref), atol=1e-3, rtol=1e-3)

    # 3) batch not divisible by tile (ragged last block, no host-side padding)
    B2 = 13
    out_p = jax.block_until_ready(
        equivariant_product_basis_block(node_feats[:B2], node_attrs[:B2], sc[:B2],
                                        params, node_tile=8))
    np.testing.assert_allclose(np.asarray(out_p), np.asarray(ref)[:B2], atol=1e-3, rtol=1e-3)

    print("KERNEL_OK")
</pallas_src>

<mosaic_0001>
module attributes {stable_mosaic.version = 11 : i64} {
  func.func @kernel(%arg0: i32, %arg1: memref<8x16xf32, #tpu.memory_space<vmem>>, %arg2: memref<8x3xf32, #tpu.memory_space<vmem>>, %arg3: memref<8x16xf32, #tpu.memory_space<vmem>>, %arg4: memref<3x1344xf32, #tpu.memory_space<vmem>>, %arg5: memref<4x192xf32, #tpu.memory_space<vmem>>, %arg6: memref<16x16xf32, #tpu.memory_space<vmem>>, %arg7: memref<8x16xf32, #tpu.memory_space<vmem>>, %arg8: memref<8x16xf32, #tpu.memory_space<vmem>>) attributes {dimension_semantics = [#tpu.dimension_semantics<parallel>], iteration_bounds = array<i64: 2>, scalar_prefetch = 0 : i64, scratch_operands = 1 : i64, tpu.core_type = #tpu.core_type<tc>, window_params = [{transform_indices = @transform_0, window_bounds = array<i64: 8, 16>}, {transform_indices = @transform_1, window_bounds = array<i64: 8, 3>}, {transform_indices = @transform_2, window_bounds = array<i64: 8, 16>}, {pipeline_mode = #tpu.pipeline_mode<synchronous>, transform_indices = @transform_3, window_bounds = array<i64: 3, 1344>}, {pipeline_mode = #tpu.pipeline_mode<synchronous>, transform_indices = @transform_4, window_bounds = array<i64: 4, 192>}, {pipeline_mode = #tpu.pipeline_mode<synchronous>, transform_indices = @transform_5, window_bounds = array<i64: 16, 16>}, {transform_indices = @transform_6, window_bounds = array<i64: 8, 16>}]} {
    %c0 = arith.constant 0 : index
    %c0_0 = arith.constant 0 : index
    %0 = vector.load %arg2[%c0, %c0_0] : memref<8x3xf32, #tpu.memory_space<vmem>>, vector<8x1xf32>
    %c0_1 = arith.constant 0 : index
    %c1 = arith.constant 1 : index
    %1 = vector.load %arg2[%c0_1, %c1] : memref<8x3xf32, #tpu.memory_space<vmem>>, vector<8x1xf32>
    %c0_2 = arith.constant 0 : index
    %c2 = arith.constant 2 : index
    %2 = vector.load %arg2[%c0_2, %c2] : memref<8x3xf32, #tpu.memory_space<vmem>>, vector<8x1xf32>
    %c0_3 = arith.constant 0 : index
    %c0_4 = arith.constant 0 : index
    %3 = vector.load %arg1[%c0_3, %c0_4] : memref<8x16xf32, #tpu.memory_space<vmem>>, vector<8x1xf32>
    %c0_5 = arith.constant 0 : index
    %c0_6 = arith.constant 0 : index
    %4 = vector.load %arg5[%c0_5, %c0_6] : memref<4x192xf32, #tpu.memory_space<vmem>>, vector<1x192xf32>
    %5 = vector.broadcast %3 : vector<8x1xf32> to vector<8x192xf32>
    %6 = vector.broadcast %4 : vector<1x192xf32> to vector<8x192xf32>
    %7 = arith.mulf %5, %6 : vector<8x192xf32>
    %c0_7 = arith.constant 0 : index
    %c4 = arith.constant 4 : index
    %8 = vector.load %arg1[%c0_7, %c4] : memref<8x16xf32, #tpu.memory_space<vmem>>, vector<8x1xf32>
    %c1_8 = arith.constant 1 : index
    %c0_9 = arith.constant 0 : index
    %9 = vector.load %arg5[%c1_8, %c0_9] : memref<4x192xf32, #tpu.memory_space<vmem>>, vector<1x192xf32>
    %10 = vector.broadcast %8 : vector<8x1xf32> to vector<8x192xf32>
    %11 = vector.broadcast %9 : vector<1x192xf32> to vector<8x192xf32>
    %12 = arith.mulf %10, %11 : vector<8x192xf32>
    %13 = arith.addf %7, %12 : vector<8x192xf32>
    %c0_10 = arith.constant 0 : index
    %c8 = arith.constant 8 : index
    %14 = vector.load %arg1[%c0_10, %c8] : memref<8x16xf32, #tpu.memory_space<vmem>>, vector<8x1xf32>
    %c2_11 = arith.constant 2 : index
    %c0_12 = arith.constant 0 : index
    %15 = vector.load %arg5[%c2_11, %c0_12] : memref<4x192xf32, #tpu.memory_space<vmem>>, vector<1x192xf32>
    %16 = vector.broadcast %14 : vector<8x1xf32> to vector<8x192xf32>
    %17 = vector.broadcast %15 : vector<1x192xf32> to vector<8x192xf32>
    %18 = arith.mulf %16, %17 : vector<8x192xf32>
    %19 = arith.addf %13, %18 : vector<8x192xf32>
    %c0_13 = arith.constant 0 : index
    %c12 = arith.constant 12 : index
    %20 = vector.load %arg1[%c0_13, %c12] : memref<8x16xf32, #tpu.memory_space<vmem>>, vector<8x1xf32>
    %c3 = arith.constant 3 : index
    %c0_14 = arith.constant 0 : index
    %21 = vector.load %arg5[%c3, %c0_14] : memref<4x192xf32, #tpu.memory_space<vmem>>, vector<1x192xf32>
    %22 = vector.broadcast %20 : vector<8x1xf32> to vector<8x192xf32>
    %23 = vector.broadcast %21 : vector<1x192xf32> to vector<8x192xf32>
    %24 = arith.mulf %22, %23 : vector<8x192xf32>
    %25 = arith.addf %19, %24 : vector<8x192xf32>
    %c0_15 = arith.constant 0 : index
    %c1_16 = arith.constant 1 : index
    %26 = vector.load %arg1[%c0_15, %c1_16] : memref<8x16xf32, #tpu.memory_space<vmem>>, vector<8x1xf32>
    %c0_17 = arith.constant 0 : index
    %c0_18 = arith.constant 0 : index
    %27 = vector.load %arg5[%c0_17, %c0_18] : memref<4x192xf32, #tpu.memory_space<vmem>>, vector<1x192xf32>
    %28 = vector.broadcast %26 : vector<8x1xf32> to vector<8x192xf32>
    %29 = vector.broadcast %27 : vector<1x192xf32> to vector<8x192xf32>
    %30 = arith.mulf %28, %29 : vector<8x192xf32>
    %c0_19 = arith.constant 0 : index
    %c5 = arith.constant 5 : index
    %31 = vector.load %arg1[%c0_19, %c5] : memref<8x16xf32, #tpu.memory_space<vmem>>, vector<8x1xf32>
    %c1_20 = arith.constant 1 : index
    %c0_21 = arith.constant 0 : index
    %32 = vector.load %arg5[%c1_20, %c0_21] : memref<4x192xf32, #tpu.memory_space<vmem>>, vector<1x192xf32>
    %33 = vector.broadcast %31 : vector<8x1xf32> to vector<8x192xf32>
    %34 = vector.broadcast %32 : vector<1x192xf32> to vector<8x192xf32>
    %35 = arith.mulf %33, %34 : vector<8x192xf32>
    %36 = arith.addf %30, %35 : vector<8x192xf32>
    %c0_22 = arith.constant 0 : index
    %c9 = arith.constant 9 : index
    %37 = vector.load %arg1[%c0_22, %c9] : memref<8x16xf32, #tpu.memory_space<vmem>>, vector<8x1xf32>
    %c2_23 = arith.constant 2 : index
    %c0_24 = arith.constant 0 : index
    %38 = vector.load %arg5[%c2_23, %c0_24] : memref<4x192xf32, #tpu.memory_space<vmem>>, vector<1x192xf32>
    %39 = vector.broadcast %37 : vector<8x1xf32> to vector<8x192xf32>
    %40 = vector.broadcast %38 : vector<1x192xf32> to vector<8x192xf32>
    %41 = arith.mulf %39, %40 : vector<8x192xf32>
    %42 = arith.addf %36, %41 : vector<8x192xf32>
    %c0_25 = arith.constant 0 : index
    %c13 = arith.constant 13 : index
    %43 = vector.load %arg1[%c0_25, %c13] : memref<8x16xf32, #tpu.memory_space<vmem>>, vector<8x1xf32>
    %c3_26 = arith.constant 3 : index
    %c0_27 = arith.constant 0 : index
    %44 = vector.load %arg5[%c3_26, %c0_27] : memref<4x192xf32, #tpu.memory_space<vmem>>, vector<1x192xf32>
    %45 = vector.broadcast %43 : vector<8x1xf32> to vector<8x192xf32>
    %46 = vector.broadcast %44 : vector<1x192xf32> to vector<8x192xf32>
    %47 = arith.mulf %45, %46 : vector<8x192xf32>
    %48 = arith.addf %42, %47 : vector<8x192xf32>
    %c0_28 = arith.constant 0 : index
    %c2_29 = arith.constant 2 : index
    %49 = vector.load %arg1[%c0_28, %c2_29] : memref<8x16xf32, #tpu.memory_space<vmem>>, vector<8x1xf32>
    %c0_30 = arith.constant 0 : index
    %c0_31 = arith.constant 0 : index
    %50 = vector.load %arg5[%c0_30, %c0_31] : memref<4x192xf32, #tpu.memory_space<vmem>>, vector<1x192xf32>
    %51 = vector.broadcast %49 : vector<8x1xf32> to vector<8x192xf32>
    %52 = vector.broadcast %50 : vector<1x192xf32> to vector<8x192xf32>
    %53 = arith.mulf %51, %52 : vector<8x192xf32>
    %c0_32 = arith.constant 0 : index
    %c6 = arith.constant 6 : index
    %54 = vector.load %arg1[%c0_32, %c6] : memref<8x16xf32, #tpu.memory_space<vmem>>, vector<8x1xf32>
    %c1_33 = arith.constant 1 : index
    %c0_34 = arith.constant 0 : index
    %55 = vector.load %arg5[%c1_33, %c0_34] : memref<4x192xf32, #tpu.memory_space<vmem>>, vector<1x192xf32>
    %56 = vector.broadcast %54 : vector<8x1xf32> to vector<8x192xf32>
    %57 = vector.broadcast %55 : vector<1x192xf32> to vector<8x192xf32>
    %58 = arith.mulf %56, %57 : vector<8x192xf32>
    %59 = arith.addf %53, %58 : vector<8x192xf32>
    %c0_35 = arith.constant 0 : index
    %c10 = arith.constant 10 : index
    %60 = vector.load %arg1[%c0_35, %c10] : memref<8x16xf32, #tpu.memory_space<vmem>>, vector<8x1xf32>
    %c2_36 = arith.constant 2 : index
    %c0_37 = arith.constant 0 : index
    %61 = vector.load %arg5[%c2_36, %c0_37] : memref<4x192xf32, #tpu.memory_space<vmem>>, vector<1x192xf32>
    %62 = vector.broadcast %60 : vector<8x1xf32> to vector<8x192xf32>
    %63 = vector.broadcast %61 : vector<1x192xf32> to vector<8x192xf32>
    %64 = arith.mulf %62, %63 : vector<8x192xf32>
    %65 = arith.addf %59, %64 : vector<8x192xf32>
    %c0_38 = arith.constant 0 : index
    %c14 = arith.constant 14 : index
    %66 = vector.load %arg1[%c0_38, %c14] : memref<8x16xf32, #tpu.memory_space<vmem>>, vector<8x1xf32>
    %c3_39 = arith.constant 3 : index
    %c0_40 = arith.constant 0 : index
    %67 = vector.load %arg5[%c3_39, %c0_40] : memref<4x192xf32, #tpu.memory_space<vmem>>, vector<1x192xf32>
    %68 = vector.broadcast %66 : vector<8x1xf32> to vector<8x192xf32>
    %69 = vector.broadcast %67 : vector<1x192xf32> to vector<8x192xf32>
    %70 = arith.mulf %68, %69 : vector<8x192xf32>
    %71 = arith.addf %65, %70 : vector<8x192xf32>
    %c0_41 = arith.constant 0 : index
    %c3_42 = arith.constant 3 : index
    %72 = vector.load %arg1[%c0_41, %c3_42] : memref<8x16xf32, #tpu.memory_space<vmem>>, vector<8x1xf32>
    %c0_43 = arith.constant 0 : index
    %c0_44 = arith.constant 0 : index
    %73 = vector.load %arg5[%c0_43, %c0_44] : memref<4x192xf32, #tpu.memory_space<vmem>>, vector<1x192xf32>
    %74 = vector.broadcast %72 : vector<8x1xf32> to vector<8x192xf32>
    %75 = vector.broadcast %73 : vector<1x192xf32> to vector<8x192xf32>
    %76 = arith.mulf %74, %75 : vector<8x192xf32>
    %c0_45 = arith.constant 0 : index
    %c7 = arith.constant 7 : index
    %77 = vector.load %arg1[%c0_45, %c7] : memref<8x16xf32, #tpu.memory_space<vmem>>, vector<8x1xf32>
    %c1_46 = arith.constant 1 : index
    %c0_47 = arith.constant 0 : index
    %78 = vector.load %arg5[%c1_46, %c0_47] : memref<4x192xf32, #tpu.memory_space<vmem>>, vector<1x192xf32>
    %79 = vector.broadcast %77 : vector<8x1xf32> to vector<8x192xf32>
    %80 = vector.broadcast %78 : vector<1x192xf32> to vector<8x192xf32>
    %81 = arith.mulf %79, %80 : vector<8x192xf32>
    %82 = arith.addf %76, %81 : vector<8x192xf32>
    %c0_48 = arith.constant 0 : index
    %c11 = arith.constant 11 : index
    %83 = vector.load %arg1[%c0_48, %c11] : memref<8x16xf32, #tpu.memory_space<vmem>>, vector<8x1xf32>
    %c2_49 = arith.constant 2 : index
    %c0_50 = arith.constant 0 : index
    %84 = vector.load %arg5[%c2_49, %c0_50] : memref<4x192xf32, #tpu.memory_space<vmem>>, vector<1x192xf32>
    %85 = vector.broadcast %83 : vector<8x1xf32> to vector<8x192xf32>
    %86 = vector.broadcast %84 : vector<1x192xf32> to vector<8x192xf32>
    %87 = arith.mulf %85, %86 : vector<8x192xf32>
    %88 = arith.addf %82, %87 : vector<8x192xf32>
    %c0_51 = arith.constant 0 : index
    %c15 = arith.constant 15 : index
    %89 = vector.load %arg1[%c0_51, %c15] : memref<8x16xf32, #tpu.memory_space<vmem>>, vector<8x1xf32>
    %c3_52 = arith.constant 3 : index
    %c0_53 = arith.constant 0 : index
    %90 = vector.load %arg5[%c3_52, %c0_53] : memref<4x192xf32, #tpu.memory_space<vmem>>, vector<1x192xf32>
    %91 = vector.broadcast %89 : vector<8x1xf32> to vector<8x192xf32>
    %92 = vector.broadcast %90 : vector<1x192xf32> to vector<8x192xf32>
    %93 = arith.mulf %91, %92 : vector<8x192xf32>
    %94 = arith.addf %88, %93 : vector<8x192xf32>
    %c0_54 = arith.constant 0 : index
    %c0_55 = arith.constant 0 : index
    %95 = vector.load %arg4[%c0_54, %c0_55] : memref<3x1344xf32, #tpu.memory_space<vmem>>, vector<1x256xf32>
    %96 = vector.broadcast %0 : vector<8x1xf32> to vector<8x256xf32>
    %97 = vector.broadcast %95 : vector<1x256xf32> to vector<8x256xf32>
    %98 = arith.mulf %96, %97 : vector<8x256xf32>
    %c1_56 = arith.constant 1 : index
    %c0_57 = arith.constant 0 : index
    %99 = vector.load %arg4[%c1_56, %c0_57] : memref<3x1344xf32, #tpu.memory_space<vmem>>, vector<1x256xf32>
    %100 = vector.broadcast %1 : vector<8x1xf32> to vector<8x256xf32>
    %101 = vector.broadcast %99 : vector<1x256xf32> to vector<8x256xf32>
    %102 = arith.mulf %100, %101 : vector<8x256xf32>
    %103 = arith.addf %98, %102 : vector<8x256xf32>
    %c2_58 = arith.constant 2 : index
    %c0_59 = arith.constant 0 : index
    %104 = vector.load %arg4[%c2_58, %c0_59] : memref<3x1344xf32, #tpu.memory_space<vmem>>, vector<1x256xf32>
    %105 = vector.broadcast %2 : vector<8x1xf32> to vector<8x256xf32>
    %106 = vector.broadcast %104 : vector<1x256xf32> to vector<8x256xf32>
    %107 = arith.mulf %105, %106 : vector<8x256xf32>
    %108 = arith.addf %103, %107 : vector<8x256xf32>
    %109 = vector.extract_strided_slice %108 {offsets = [0, 0], sizes = [8, 64], strides = [1, 1]} : vector<8x256xf32> to vector<8x64xf32>
    %110 = vector.extract_strided_slice %25 {offsets = [0, 0], sizes = [8, 64], strides = [1, 1]} : vector<8x192xf32> to vector<8x64xf32>
    %111 = arith.mulf %109, %110 : vector<8x64xf32>
    %112 = vector.extract_strided_slice %108 {offsets = [0, 64], sizes = [8, 64], strides = [1, 1]} : vector<8x256xf32> to vector<8x64xf32>
    %113 = vector.extract_strided_slice %48 {offsets = [0, 0], sizes = [8, 64], strides = [1, 1]} : vector<8x192xf32> to vector<8x64xf32>
    %114 = arith.mulf %112, %113 : vector<8x64xf32>
    %115 = vector.extract_strided_slice %108 {offsets = [0, 128], sizes = [8, 64], strides = [1, 1]} : vector<8x256xf32> to vector<8x64xf32>
    %116 = vector.extract_strided_slice %71 {offsets = [0, 0], sizes = [8, 64], strides = [1, 1]} : vector<8x192xf32> to vector<8x64xf32>
    %117 = arith.mulf %115, %116 : vector<8x64xf32>
    %118 = vector.extract_strided_slice %108 {offsets = [0, 192], sizes = [8, 64], strides = [1, 1]} : vector<8x256xf32> to vector<8x64xf32>
    %119 = vector.extract_strided_slice %94 {offsets = [0, 0], sizes = [8, 64], strides = [1, 1]} : vector<8x192xf32> to vector<8x64xf32>
    %120 = arith.mulf %118, %119 : vector<8x64xf32>
    %121 = arith.addf %111, %114 : vector<8x64xf32>
    %122 = arith.addf %117, %120 : vector<8x64xf32>
    %123 = arith.addf %121, %122 : vector<8x64xf32>
    %c0_60 = arith.constant 0 : index
    %c256 = arith.constant 256 : index
    %124 = vector.load %arg4[%c0_60, %c256] : memref<3x1344xf32, #tpu.memory_space<vmem>>, vector<1x64xf32>
    %125 = vector.broadcast %0 : vector<8x1xf32> to vector<8x64xf32>
    %126 = vector.broadcast %124 : vector<1x64xf32> to vector<8x64xf32>
    %127 = arith.mulf %125, %126 : vector<8x64xf32>
    %c1_61 = arith.constant 1 : index
    %c256_62 = arith.constant 256 : index
    %128 = vector.load %arg4[%c1_61, %c256_62] : memref<3x1344xf32, #tpu.memory_space<vmem>>, vector<1x64xf32>
    %129 = vector.broadcast %1 : vector<8x1xf32> to vector<8x64xf32>
    %130 = vector.broadcast %128 : vector<1x64xf32> to vector<8x64xf32>
    %131 = arith.mulf %129, %130 : vector<8x64xf32>
    %132 = arith.addf %127, %131 : vector<8x64xf32>
    %c2_63 = arith.constant 2 : index
    %c256_64 = arith.constant 256 : index
    %133 = vector.load %arg4[%c2_63, %c256_64] : memref<3x1344xf32, #tpu.memory_space<vmem>>, vector<1x64xf32>
    %134 = vector.broadcast %2 : vector<8x1xf32> to vector<8x64xf32>
    %135 = vector.broadcast %133 : vector<1x64xf32> to vector<8x64xf32>
    %136 = arith.mulf %134, %135 : vector<8x64xf32>
    %137 = arith.addf %132, %136 : vector<8x64xf32>
    %138 = arith.addf %123, %137 : vector<8x64xf32>
    %139 = vector.extract_strided_slice %138 {offsets = [0, 0], sizes = [8, 16], strides = [1, 1]} : vector<8x64xf32> to vector<8x16xf32>
    %140 = vector.extract_strided_slice %25 {offsets = [0, 0], sizes = [8, 16], strides = [1, 1]} : vector<8x192xf32> to vector<8x16xf32>
    %141 = arith.mulf %139, %140 : vector<8x16xf32>
    %142 = vector.extract_strided_slice %138 {offsets = [0, 16], sizes = [8, 16], strides = [1, 1]} : vector<8x64xf32> to vector<8x16xf32>
    %143 = vector.extract_strided_slice %48 {offsets = [0, 0], sizes = [8, 16], strides = [1, 1]} : vector<8x192xf32> to vector<8x16xf32>
    %144 = arith.mulf %142, %143 : vector<8x16xf32>
    %145 = vector.extract_strided_slice %138 {offsets = [0, 32], sizes = [8, 16], strides = [1, 1]} : vector<8x64xf32> to vector<8x16xf32>
    %146 = vector.extract_strided_slice %71 {offsets = [0, 0], sizes = [8, 16], strides = [1, 1]} : vector<8x192xf32> to vector<8x16xf32>
    %147 = arith.mulf %145, %146 : vector<8x16xf32>
    %148 = vector.extract_strided_slice %138 {offsets = [0, 48], sizes = [8, 16], strides = [1, 1]} : vector<8x64xf32> to vector<8x16xf32>
    %149 = vector.extract_strided_slice %94 {offsets = [0, 0], sizes = [8, 16], strides = [1, 1]} : vector<8x192xf32> to vector<8x16xf32>
    %150 = arith.mulf %148, %149 : vector<8x16xf32>
    %151 = arith.addf %141, %144 : vector<8x16xf32>
    %152 = arith.addf %147, %150 : vector<8x16xf32>
    %153 = arith.addf %151, %152 : vector<8x16xf32>
    %c0_65 = arith.constant 0 : index
    %c320 = arith.constant 320 : index
    %154 = vector.load %arg4[%c0_65, %c320] : memref<3x1344xf32, #tpu.memory_space<vmem>>, vector<1x16xf32>
    %155 = vector.broadcast %0 : vector<8x1xf32> to vector<8x16xf32>
    %156 = vector.broadcast %154 : vector<1x16xf32> to vector<8x16xf32>
    %157 = arith.mulf %155, %156 : vector<8x16xf32>
    %c1_66 = arith.constant 1 : index
    %c320_67 = arith.constant 320 : index
    %158 = vector.load %arg4[%c1_66, %c320_67] : memref<3x1344xf32, #tpu.memory_space<vmem>>, vector<1x16xf32>
    %159 = vector.broadcast %1 : vector<8x1xf32> to vector<8x16xf32>
    %160 = vector.broadcast %158 : vector<1x16xf32> to vector<8x16xf32>
    %161 = arith.mulf %159, %160 : vector<8x16xf32>
    %162 = arith.addf %157, %161 : vector<8x16xf32>
    %c2_68 = arith.constant 2 : index
    %c320_69 = arith.constant 320 : index
    %163 = vector.load %arg4[%c2_68, %c320_69] : memref<3x1344xf32, #tpu.memory_space<vmem>>, vector<1x16xf32>
    %164 = vector.broadcast %2 : vector<8x1xf32> to vector<8x16xf32>
    %165 = vector.broadcast %163 : vector<1x16xf32> to vector<8x16xf32>
    %166 = arith.mulf %164, %165 : vector<8x16xf32>
    %167 = arith.addf %162, %166 : vector<8x16xf32>
    %168 = arith.addf %153, %167 : vector<8x16xf32>
    %169 = vector.extract_strided_slice %168 {offsets = [0, 0], sizes = [8, 4], strides = [1, 1]} : vector<8x16xf32> to vector<8x4xf32>
    %170 = vector.extract_strided_slice %25 {offsets = [0, 0], sizes = [8, 4], strides = [1, 1]} : vector<8x192xf32> to vector<8x4xf32>
    %171 = arith.mulf %169, %170 : vector<8x4xf32>
    %172 = vector.extract_strided_slice %168 {offsets = [0, 4], sizes = [8, 4], strides = [1, 1]} : vector<8x16xf32> to vector<8x4xf32>
    %173 = vector.extract_strided_slice %48 {offsets = [0, 0], sizes = [8, 4], strides = [1, 1]} : vector<8x192xf32> to vector<8x4xf32>
    %174 = arith.mulf %172, %173 : vector<8x4xf32>
    %175 = vector.extract_strided_slice %168 {offsets = [0, 8], sizes = [8, 4], strides = [1, 1]} : vector<8x16xf32> to vector<8x4xf32>
    %176 = vector.extract_strided_slice %71 {offsets = [0, 0], sizes = [8, 4], strides = [1, 1]} : vector<8x192xf32> to vector<8x4xf32>
    %177 = arith.mulf %175, %176 : vector<8x4xf32>
    %178 = vector.extract_strided_slice %168 {offsets = [0, 12], sizes = [8, 4], strides = [1, 1]} : vector<8x16xf32> to vector<8x4xf32>
    %179 = vector.extract_strided_slice %94 {offsets = [0, 0], sizes = [8, 4], strides = [1, 1]} : vector<8x192xf32> to vector<8x4xf32>
    %180 = arith.mulf %178, %179 : vector<8x4xf32>
    %181 = arith.addf %171, %174 : vector<8x4xf32>
    %182 = arith.addf %177, %180 : vector<8x4xf32>
    %183 = arith.addf %181, %182 : vector<8x4xf32>
    %c0_70 = arith.constant 0 : index
    %c0_71 = arith.constant 0 : index
    %184 = vector.load %arg8[%c0_70, %c0_71] : memref<8x16xf32, #tpu.memory_space<vmem>>, vector<8x4xf32>
    tpu.vector_store %arg8[%c0_70, %c0_71], %183 {strides = array<i32>} : memref<8x16xf32, #tpu.memory_space<vmem>>, vector<8x4xf32>,
    %c0_72 = arith.constant 0 : index
    %c336 = arith.constant 336 : index
    %185 = vector.load %arg4[%c0_72, %c336] : memref<3x1344xf32, #tpu.memory_space<vmem>>, vector<1x768xf32>
    %186 = vector.broadcast %0 : vector<8x1xf32> to vector<8x768xf32>
    %187 = vector.broadcast %185 : vector<1x768xf32> to vector<8x768xf32>
    %188 = arith.mulf %186, %187 : vector<8x768xf32>
    %c1_73 = arith.constant 1 : index
    %c336_74 = arith.constant 336 : index
    %189 = vector.load %arg4[%c1_73, %c336_74] : memref<3x1344xf32, #tpu.memory_space<vmem>>, vector<1x768xf32>
    %190 = vector.broadcast %1 : vector<8x1xf32> to vector<8x768xf32>
    %191 = vector.broadcast %189 : vector<1x768xf32> to vector<8x768xf32>
    %192 = arith.mulf %190, %191 : vector<8x768xf32>
    %193 = arith.addf %188, %192 : vector<8x768xf32>
    %c2_75 = arith.constant 2 : index
    %c336_76 = arith.constant 336 : index
    %194 = vector.load %arg4[%c2_75, %c336_76] : memref<3x1344xf32, #tpu.memory_space<vmem>>, vector<1x768xf32>
    %195 = vector.broadcast %2 : vector<8x1xf32> to vector<8x768xf32>
    %196 = vector.broadcast %194 : vector<1x768xf32> to vector<8x768xf32>
    %197 = arith.mulf %195, %196 : vector<8x768xf32>
    %198 = arith.addf %193, %197 : vector<8x768xf32>
    %199 = vector.extract_strided_slice %198 {offsets = [0, 0], sizes = [8, 192], strides = [1, 1]} : vector<8x768xf32> to vector<8x192xf32>
    %200 = arith.mulf %199, %25 : vector<8x192xf32>
    %201 = vector.extract_strided_slice %198 {offsets = [0, 192], sizes = [8, 192], strides = [1, 1]} : vector<8x768xf32> to vector<8x192xf32>
    %202 = arith.mulf %201, %48 : vector<8x192xf32>
    %203 = vector.extract_strided_slice %198 {offsets = [0, 384], sizes = [8, 192], strides = [1, 1]} : vector<8x768xf32> to vector<8x192xf32>
    %204 = arith.mulf %203, %71 : vector<8x192xf32>
    %205 = vector.extract_strided_slice %198 {offsets = [0, 576], sizes = [8, 192], strides = [1, 1]} : vector<8x768xf32> to vector<8x192xf32>
    %206 = arith.mulf %205, %94 : vector<8x192xf32>
    %207 = arith.addf %200, %202 : vector<8x192xf32>
    %208 = arith.addf %204, %206 : vector<8x192xf32>
    %209 = arith.addf %207, %208 : vector<8x192xf32>
    %c0_77 = arith.constant 0 : index
    %c1104 = arith.constant 1104 : index
    %210 = vector.load %arg4[%c0_77, %c1104] : memref<3x1344xf32, #tpu.memory_space<vmem>>, vector<1x192xf32>
    %211 = vector.broadcast %0 : vector<8x1xf32> to vector<8x192xf32>
    %212 = vector.broadcast %210 : vector<1x192xf32> to vector<8x192xf32>
    %213 = arith.mulf %211, %212 : vector<8x192xf32>
    %c1_78 = arith.constant 1 : index
    %c1104_79 = arith.constant 1104 : index
    %214 = vector.load %arg4[%c1_78, %c1104_79] : memref<3x1344xf32, #tpu.memory_space<vmem>>, vector<1x192xf32>
    %215 = vector.broadcast %1 : vector<8x1xf32> to vector<8x192xf32>
    %216 = vector.broadcast %214 : vector<1x192xf32> to vector<8x192xf32>
    %217 = arith.mulf %215, %216 : vector<8x192xf32>
    %218 = arith.addf %213, %217 : vector<8x192xf32>
    %c2_80 = arith.constant 2 : index
    %c1104_81 = arith.constant 1104 : index
    %219 = vector.load %arg4[%c2_80, %c1104_81] : memref<3x1344xf32, #tpu.memory_space<vmem>>, vector<1x192xf32>
    %220 = vector.broadcast %2 : vector<8x1xf32> to vector<8x192xf32>
    %221 = vector.broadcast %219 : vector<1x192xf32> to vector<8x192xf32>
    %222 = arith.mulf %220, %221 : vector<8x192xf32>
    %223 = arith.addf %218, %222 : vector<8x192xf32>
    %224 = arith.addf %209, %223 : vector<8x192xf32>
    %225 = vector.extract_strided_slice %224 {offsets = [0, 0], sizes = [8, 48], strides = [1, 1]} : vector<8x192xf32> to vector<8x48xf32>
    %226 = vector.extract_strided_slice %25 {offsets = [0, 0], sizes = [8, 48], strides = [1, 1]} : vector<8x192xf32> to vector<8x48xf32>
    %227 = arith.mulf %225, %226 : vector<8x48xf32>
    %228 = vector.extract_strided_slice %224 {offsets = [0, 48], sizes = [8, 48], strides = [1, 1]} : vector<8x192xf32> to vector<8x48xf32>
    %229 = vector.extract_strided_slice %48 {offsets = [0, 0], sizes = [8, 48], strides = [1, 1]} : vector<8x192xf32> to vector<8x48xf32>
    %230 = arith.mulf %228, %229 : vector<8x48xf32>
    %231 = vector.extract_strided_slice %224 {offsets = [0, 96], sizes = [8, 48], strides = [1, 1]} : vector<8x192xf32> to vector<8x48xf32>
    %232 = vector.extract_strided_slice %71 {offsets = [0, 0], sizes = [8, 48], strides = [1, 1]} : vector<8x192xf32> to vector<8x48xf32>
    %233 = arith.mulf %231, %232 : vector<8x48xf32>
    %234 = vector.extract_strided_slice %224 {offsets = [0, 144], sizes = [8, 48], strides = [1, 1]} : vector<8x192xf32> to vector<8x48xf32>
    %235 = vector.extract_strided_slice %94 {offsets = [0, 0], sizes = [8, 48], strides = [1, 1]} : vector<8x192xf32> to vector<8x48xf32>
    %236 = arith.mulf %234, %235 : vector<8x48xf32>
    %237 = arith.addf %227, %230 : vector<8x48xf32>
    %238 = arith.addf %233, %236 : vector<8x48xf32>
    %239 = arith.addf %237, %238 : vector<8x48xf32>
    %c0_82 = arith.constant 0 : index
    %c1296 = arith.constant 1296 : index
    %240 = vector.load %arg4[%c0_82, %c1296] : memref<3x1344xf32, #tpu.memory_space<vmem>>, vector<1x48xf32>
    %241 = vector.broadcast %0 : vector<8x1xf32> to vector<8x48xf32>
    %242 = vector.broadcast %240 : vector<1x48xf32> to vector<8x48xf32>
    %243 = arith.mulf %241, %242 : vector<8x48xf32>
    %c1_83 = arith.constant 1 : index
    %c1296_84 = arith.constant 1296 : index
    %244 = vector.load %arg4[%c1_83, %c1296_84] : memref<3x1344xf32, #tpu.memory_space<vmem>>, vector<1x48xf32>
    %245 = vector.broadcast %1 : vector<8x1xf32> to vector<8x48xf32>
    %246 = vector.broadcast %244 : vector<1x48xf32> to vector<8x48xf32>
    %247 = arith.mulf %245, %246 : vector<8x48xf32>
    %248 = arith.addf %243, %247 : vector<8x48xf32>
    %c2_85 = arith.constant 2 : index
    %c1296_86 = arith.constant 1296 : index
    %249 = vector.load %arg4[%c2_85, %c1296_86] : memref<3x1344xf32, #tpu.memory_space<vmem>>, vector<1x48xf32>
    %250 = vector.broadcast %2 : vector<8x1xf32> to vector<8x48xf32>
    %251 = vector.broadcast %249 : vector<1x48xf32> to vector<8x48xf32>
    %252 = arith.mulf %250, %251 : vector<8x48xf32>
    %253 = arith.addf %248, %252 : vector<8x48xf32>
    %254 = arith.addf %239, %253 : vector<8x48xf32>
    %255 = vector.extract_strided_slice %254 {offsets = [0, 0], sizes = [8, 12], strides = [1, 1]} : vector<8x48xf32> to vector<8x12xf32>
    %256 = vector.extract_strided_slice %25 {offsets = [0, 0], sizes = [8, 12], strides = [1, 1]} : vector<8x192xf32> to vector<8x12xf32>
    %257 = arith.mulf %255, %256 : vector<8x12xf32>
    %258 = vector.extract_strided_slice %254 {offsets = [0, 12], sizes = [8, 12], strides = [1, 1]} : vector<8x48xf32> to vector<8x12xf32>
    %259 = vector.extract_strided_slice %48 {offsets = [0, 0], sizes = [8, 12], strides = [1, 1]} : vector<8x192xf32> to vector<8x12xf32>
    %260 = arith.mulf %258, %259 : vector<8x12xf32>
    %261 = vector.extract_strided_slice %254 {offsets = [0, 24], sizes = [8, 12], strides = [1, 1]} : vector<8x48xf32> to vector<8x12xf32>
    %262 = vector.extract_strided_slice %71 {offsets = [0, 0], sizes = [8, 12], strides = [1, 1]} : vector<8x192xf32> to vector<8x12xf32>
    %263 = arith.mulf %261, %262 : vector<8x12xf32>
    %264 = vector.extract_strided_slice %254 {offsets = [0, 36], sizes = [8, 12], strides = [1, 1]} : vector<8x48xf32> to vector<8x12xf32>
    %265 = vector.extract_strided_slice %94 {offsets = [0, 0], sizes = [8, 12], strides = [1, 1]} : vector<8x192xf32> to vector<8x12xf32>
    %266 = arith.mulf %264, %265 : vector<8x12xf32>
    %267 = arith.addf %257, %260 : vector<8x12xf32>
    %268 = arith.addf %263, %266 : vector<8x12xf32>
    %269 = arith.addf %267, %268 : vector<8x12xf32>
    %c0_87 = arith.constant 0 : index
    %c4_88 = arith.constant 4 : index
    %270 = vector.load %arg8[%c0_87, %c4_88] : memref<8x16xf32, #tpu.memory_space<vmem>>, vector<8x12xf32>
    tpu.vector_store %arg8[%c0_87, %c4_88], %269 {strides = array<i32>} : memref<8x16xf32, #tpu.memory_space<vmem>>, vector<8x12xf32>,
    %c0_89 = arith.constant 0 : index
    %c0_90 = arith.constant 0 : index
    %271 = vector.load %arg3[%c0_89, %c0_90] : memref<8x16xf32, #tpu.memory_space<vmem>>, vector<8x16xf32>
    %c0_91 = arith.constant 0 : index
    %c0_92 = arith.constant 0 : index
    %272 = vector.load %arg8[%c0_91, %c0_92] : memref<8x16xf32, #tpu.memory_space<vmem>>, vector<8x16xf32>
    %c0_93 = arith.constant 0 : index
    %c0_94 = arith.constant 0 : index
    %273 = vector.load %arg6[%c0_93, %c0_94] : memref<16x16xf32, #tpu.memory_space<vmem>>, vector<16x16xf32>
    %cst = arith.constant dense<0.000000e+00> : vector<8x16xf32>
    %274 = tpu.matmul %272, %273, %cst {dimension_numbers = #tpu.dot_dimension_numbers<[1], [0], [0], [1], [0, 0, 1, 1], [], []>, precision = #tpu.contract_precision<fp32>} : vector<8x16xf32>, vector<16x16xf32>, vector<8x16xf32> -> vector<8x16xf32>
    %275 = arith.addf %271, %274 : vector<8x16xf32>
    %c0_95 = arith.constant 0 : index
    %c0_96 = arith.constant 0 : index
    %276 = vector.load %arg7[%c0_95, %c0_96] : memref<8x16xf32, #tpu.memory_space<vmem>>, vector<8x16xf32>
    tpu.vector_store %arg7[%c0_95, %c0_96], %275 {strides = array<i32>} : memref<8x16xf32, #tpu.memory_space<vmem>>, vector<8x16xf32>,
    return
  }
  func.func @transform_0(%arg0: i32) -> (i32, i32) {
    %c0_i32 = arith.constant 0 : i32
    %c0_i32_0 = arith.constant 0 : i32
    return %arg0, %c0_i32 : i32, i32
  }
  func.func @transform_1(%arg0: i32) -> (i32, i32) {
    %c0_i32 = arith.constant 0 : i32
    %c0_i32_0 = arith.constant 0 : i32
    return %arg0, %c0_i32 : i32, i32
  }
  func.func @transform_2(%arg0: i32) -> (i32, i32) {
    %c0_i32 = arith.constant 0 : i32
    %c0_i32_0 = arith.constant 0 : i32
    return %arg0, %c0_i32 : i32, i32
  }
  func.func @transform_3(%arg0: i32) -> (i32, i32) {
    %c0_i32 = arith.constant 0 : i32
    %c0_i32_0 = arith.constant 0 : i32
    %c0_i32_1 = arith.constant 0 : i32
    return %c0_i32, %c0_i32_0 : i32, i32
  }
  func.func @transform_4(%arg0: i32) -> (i32, i32) {
    %c0_i32 = arith.constant 0 : i32
    %c0_i32_0 = arith.constant 0 : i32
    %c0_i32_1 = arith.constant 0 : i32
    return %c0_i32, %c0_i32_0 : i32, i32
  }
  func.func @transform_5(%arg0: i32) -> (i32, i32) {
    %c0_i32 = arith.constant 0 : i32
    %c0_i32_0 = arith.constant 0 : i32
    %c0_i32_1 = arith.constant 0 : i32
    return %c0_i32, %c0_i32_0 : i32, i32
  }
  func.func @transform_6(%arg0: i32) -> (i32, i32) {
    %c0_i32 = arith.constant 0 : i32
    %c0_i32_0 = arith.constant 0 : i32
    return %arg0, %c0_i32 : i32, i32
  }
}

</mosaic_0001>

<bundles_post_ra>
// kernel: tpu_custom_call.1
= control target key start
LH: loop header
LB: loop body
LE: loop exit
PB: predicated region body
PF: predicated region fallthrough
CT: control target
= control target key end

     0   :  { %s2629_s0 = inlined_call_operand.vmem [shape: f32[16,16], index: 0, kind: input, shape index: {}]   ;;  %s2630_s1 = inlined_call_operand.vmem [shape: f32[16,3], index: 1, kind: input, shape index: {}]   ;;  %s2631_s2 = inlined_call_operand.hbm [shape: f32[16,16], index: 2, kind: input, shape index: {}]   ;;  %s2632_s3 = inlined_call_operand.hbm [shape: f32[3,1344], index: 3, kind: input, shape index: {}]   ;;  %s2633_s4 = inlined_call_operand.vmem [shape: f32[4,192], index: 4, kind: input, shape index: {}]   ;;  %s2634_s5 = inlined_call_operand.hbm [shape: f32[16,16], index: 5, kind: input, shape index: {}]   ;;  %s2635_s6 = inlined_call_operand.hbm [shape: f32[16,16], index: 6, kind: output, shape index: {}]  }
   0x1   :  { %2643 = sst [smem:[#allocation16_spill]] %s2632_s3 }
   0x2   :  { %11 = vsyncpa [#allocation4], 0 }
   0x3   :  { %13 = vsyncpa [#allocation4 + $0x1], 0 }
   0x4   :  { %14 = vsyncpa [#allocation7], 0 }
   0x5   :  { %15 = vsyncpa [#allocation5], 0 }
   0x6   :  { %17 = vsyncpa [#allocation5 + $0x1], 0  ;;  %s2084_s21 = smov 0   ;;  %s2086_s22 = smov 0  }
   0x7   :  { %s2088_s23 = smov 0   ;;  %s2090_s24 = smov 0  }
   0x8 LB: > { %s2105_s25 = sadd.s32 4294967295, %s2007_s24   ;;  %s1650_s26 = sadd.s32 4294967294, %s2007_s24   ;;  %s2007_s24 = sphi %s2090_s24, %s2671_s24   ;;  %s2003_s23 = sphi %s2088_s23, %s2670_s23   ;;  %s1999_s22 = sphi %s2086_s22, %s2669_s22   ;;  %s1995_s21 = sphi %s2084_s21, %s2668_s21  }
   0x9   : > { %p95_p0 = scmp.ne.s32.totalorder %s1999_s22, %s1995_s21  ;;  %p2636_p1 = scmp.eq.s32.totalorder %s2105_s25, 0 }
   0xa   : > { %p188_p3 = scmp.eq.s32.totalorder %s1650_s26, 1  ;;  %p1651_p5 = scmp.ge.s32.totalorder %s2007_s24, 1 }
   0xb   : > { %p2114_p4 = por %p2636_p1, %p95_p0  ;;  %p195_p7 = scmp.lt.s32.totalorder %s2007_s24, 3 }
   0xc   : > { %p2119_p6 = por %p188_p3, %p95_p0  ;;  %s2009_s30 = smov [#allocation6]  }
   0xd   : > { %s2644_s27 = scalar_select %p2114_p4, 1, 0 }
   0xe   : > { %s2645_s28 = scalar_select %p2119_p6, 1, 0 }
   0xf   : > { %p2124_p8 = pnand %p1651_p5, %p195_p7  ;;  %s208_s7 = sshll.u32 %s2009_s30, 4  ;;  %s209_s7 = int_to_ptr.vmem [resolvable:$true] %s208_s7 }
  0x10   : > { %s2010_s8 = smov [#allocation8]   ;;  %s1870_s11 = scalar_lea.vmem %s209_s7, 704 }
  0x11   : > { %s2646_s29 = scalar_select %p2124_p8, 1, 0 }
  0x12   : > { %p1749_p10 = pneg %p2124_p8  ;;  %s221_s9 = sshll.u32 %s2010_s8, 4  ;;  %s222_s9 = int_to_ptr.vmem [resolvable:$true] %s221_s9 }
  0x13   : > { %p1871_p13 = scmp.ne.s32.totalorder %s209_s7, %s1870_s11  ;;  %p1878_p5 = scmp.lt.s32.totalorder %s209_s7, %s209_s7 }
  0x14   : > { %p2133_p11 = pnand %p1749_p10, %p2636_p1  ;;  %p1879_p7 = scmp.lt.s32.totalorder %s1870_s11, %s1870_s11 }
  0x16   : > { %p1861_p12 = pneg %p2133_p11  ;;  %p1880_p9 = por %p1879_p7, %p1878_p5 }
  0x18   : > { %p1873_p0 = pnand %p1871_p13, %p1861_p12 }
  0x1a   : > { %p1874_p3 = pneg %p1873_p0 }
  0x1c   : > { %p1881_p2 = pnand %p1880_p9, %p1874_p3 }
  0x1e   : > { %1884 = shalt.err (!%p1881_p2)
}
  0x1f   : > { %s2648_s3 = sld [smem:[#allocation16_spill]]  ;;  %s1896_s14 = scalar_lea.vmem %s222_s9, 256 }
  0x20   : > { %p1897_p10 = scmp.ne.s32.totalorder %s222_s9, %s1896_s14  ;;  %p1904_p13 = scmp.lt.s32.totalorder %s222_s9, %s222_s9 }
  0x21   : > { %p1905_p0 = scmp.lt.s32.totalorder %s1896_s14, %s1896_s14 }
  0x22   : > { %p1899_p1 = pnand %p1897_p10, %p1861_p12 }
  0x23   : > { %p1906_p4 = por %p1905_p0, %p1904_p13 }
  0x24   : > { %p1900_p6 = pneg %p1899_p1 }
  0x25   : > { %1752 = dma.hbm_to_vmem [thread:$0]  (!%p2133_p11), %s2648_s3, 704, %s209_s7, [#allocation7]  }
  0x26   : > { %p1907_p8 = pnand %p1906_p4, %p1900_p6 }
  0x28   : > { %1910 = shalt.err (!%p1907_p8)
}
  0x29   : > { %s2011_s15 = smov 128   ;;  %s2012_s16 = smov 8  }
  0x2a   : > { %1755 = dma.hbm_to_vmem [thread:$0]  (!%p2133_p11), %s2634_s5, 256, %s222_s9, [#allocation7], %s2011_s15, %s2011_s15, %s2012_s16  }
  0x2b   : > { %s2156_s19 = sadd.s32 1, %s2007_s24   ;;  %s82_s20 = sadd.s32 1, %s2003_s23 }
  0x2c   : > { %s79_s26 = ssub.s32 %s2007_s24, %s2156_s19  ;;  %p89_p1 = scmp.ne.s32.totalorder %s2003_s23, %s1999_s22 }
  0x2d   : > { %p80_p2 = scmp.eq.s32.totalorder %s79_s26, 0  ;;  %p90_p4 = scmp.eq.s32.totalorder %s2007_s24, 0 }
  0x2e   : > { %p2649_p6 = scmp.eq.s32.totalorder %s2105_s25, 1  ;;  %p1766_p9 = scmp.lt.s32.totalorder %s2007_s24, 2 }
  0x2f   : > { %s2172_s7 = scalar_select %p80_p2, %s2003_s23, %s82_s20  }
  0x30   : > { %p2166_p8 = por %p2649_p6, %p89_p1  ;;  %p91_p12 = por %p90_p4, %p89_p1 }
  0x31   : > { %s249_s8 = sand.u32 1, %s2003_s23   ;;  %s1656_s9 = sshll.u32 %s2007_s24, 7 }
  0x32   : > { %s2650_s30 = scalar_select %p2166_p8, 1, 0 }
  0x33   : > { %s1655_s10 = sshll.u32 %s249_s8, 3  ;;  %s2179_s13 = scalar_lea.hbm %s2631_s2, %s1656_s9 }
  0x34   : > { %s253_s14 = scalar_lea.vmem [#allocation3], %s1655_s10  ;;  %p2181_p11 = pnand %p1766_p9, %p91_p12 }
  0x35   : > { %s260_s15 = sshll.u32 %s253_s14, 4  ;;  %s250_s17 = scalar_lea.sflag [#allocation4], %s249_s8  ;;  %s261_s15 = int_to_ptr.vmem [resolvable:$true] %s260_s15 }
  0x36   : > { %s1911_s18 = scalar_lea.hbm %s2179_s13, 128  ;;  %p1913_p5 = pneg %p2181_p11 }
  0x37   : > { %p1912_p3 = scmp.ne.s32.totalorder %s2179_s13, %s1911_s18  ;;  %s1916_s9 = scalar_lea.hbm %s2631_s2, 256 }
  0x38   : > { %p1917_p13 = scmp.lt.s32.totalorder %s2179_s13, %s2631_s2  ;;  %p1918_p0 = scmp.lt.s32.totalorder %s1916_s9, %s1911_s18 }
  0x39   : > { %p1914_p7 = pnand %p1913_p5, %p1912_p3 }
  0x3a   : > { %p1919_p1 = por %p1918_p0, %p1917_p13 }
  0x3b   : > { %p1915_p10 = pneg %p1914_p7 }
  0x3d   : > { %p1920_p2 = pnand %p1919_p1, %p1915_p10 }
  0x3f   : > { %1923 = shalt.err (!%p1920_p2)
}
  0x40   : > { %s1924_s12 = scalar_lea.vmem %s261_s15, 128  ;;  %s2013_s8 = smov [#allocation3]  }
  0x41   : > { %p1925_p4 = scmp.ne.s32.totalorder %s261_s15, %s1924_s12  ;;  %s1929_s14 = sshll.u32 %s2013_s8, 4  ;;  %s1930_s14 = int_to_ptr.vmem [resolvable:$false] %s1929_s14 }
  0x42   : > { %s1931_s3 = scalar_lea.vmem %s1930_s14, 256  ;;  %p1932_p12 = scmp.lt.s32.totalorder %s261_s15, %s1930_s14 }
  0x43   : > { %p1927_p6 = pnand %p1925_p4, %p1913_p5  ;;  %p1933_p3 = scmp.lt.s32.totalorder %s1931_s3, %s1924_s12 }
  0x45   : > { %p1928_p9 = pneg %p1927_p6  ;;  %p1934_p7 = por %p1933_p3, %p1932_p12 }
  0x47   : > { %p1935_p8 = pnand %p1934_p7, %p1928_p9 }
  0x49   : > { %1938 = shalt.err (!%p1935_p8)
}
  0x4a   : > { %1759 = dma.hbm_to_vmem [thread:$0]  (!%p2181_p11), %s2179_s13, 128, %s261_s15, %s250_s17  }
  0x4b   : > { %p2652_p10 = scmp.ne.s32.totalorder %s2646_s29, 0 }
  0x4d   : > { %269 = sbr.rel (%p2652_p10) target bundleno = 1313 (0x521), region = 44 }
  0x52   : > { %s2202_s18 = sand.u32 1, %s1999_s22   ;;  %p2653_p8 = scmp.ne.s32.totalorder %s2644_s27, 0 }
  0x53   : > { %s1658_s20 = sshll.u32 %s2202_s18, 3  ;;  %s272_s26 = scalar_lea.sflag [#allocation4], %s2202_s18 }
  0x54   : > { %s2208_s3 = scalar_lea.vmem [#allocation3], %s1658_s20 }
  0x55   : > { %1982 = dma.done.wait (%p2653_p8), %s272_s26, 128  }
  0x56   : > { %1984 = vsyncadd (%p2653_p8), %s272_s26, 4294967168  ;;  %p2654_p11 = scmp.eq.s32.totalorder %s2105_s25, 0 }
  0x58   : > { %1986 = dma.done.wait (%p2654_p11), [#allocation7], 960   ;;  %p2655_p5 = pmov %p2654_p11 }
  0x59   : > { %p320_p13 = scmp.lt.s32.totalorder %s2105_s25, 1  ;;  %v2014_v0 = vmov 3   ;;  %v2015_v1 = vmov 1   ;;  %v2016_v3 = vmov 7   ;;  %v2017_v4 = vmov 5   ;;  %s2030_s15 = smov 16  }
  0x5a   : > { %1988 = vsyncadd (%p2655_p5), [#allocation7], 4294966336  ;;  %1842 = vset.pattern.permute.xlu1 %v2014_v0  ;;  %1840 = vset.pattern.permute.xlu0 %v2015_v1  ;;  %v2018_v5 = vmov 9   ;;  %v2019_v6 = vmov 11   ;;  %v2020_v7 = vmov 13   ;;  %v2021_v8 = vmov 6  }
  0x5b   : > { %s2220_s29 = scalar_select %p320_p13, %s2105_s25, 1  ;;  %v2022_v9 = vmov 15   ;;  %v2023_v10 = vmov 0   ;;  %v2024_v12 = vmov 4   ;;  %v2025_v13 = vmov 14  }
  0x5c   : > { %v2026_v14 = vmov 2   ;;  %v2027_v15 = vmov 8   ;;  %v2028_v16 = vmov 10   ;;  %v2029_v17 = vmov 12   ;;  %s2032_s17 = smov 64   ;;  %s2033_s9 = smov 96  }
  0x5d   : > { %s1662_s13 = sshll.u32 %s2220_s29, 3  ;;  %v337_v18 = vlaneseq  ;;  %v330_v24 = vld [vmem:[%s2633_s4] ss:$4 sm:$0x3]  ;;  %vm837_vm0 = vcmask 130048   ;;  %vm826_vm1 = vcmask 654336  }
  0x5e   : > { %s323_s16 = scalar_lea.vmem %s2629_s0, %s1662_s13  ;;  %s327_s11 = scalar_lea.vmem %s2630_s1, %s1662_s13  ;;  %v1664_v25 = vld [vmem:[%s2633_s4 + $0x1] ss:$4 sm:$0x3]  ;;  %v1665_v26 = vld [vmem:[%s2633_s4 + $0x2] ss:$4 sm:$0x3] }
  0x5f   : > { %v329_v2 = vld [vmem:[%s323_s16] sm:$0xff]  ;;  %v2233_v19 = vshrl.u32 %v337_v18, 7  ;;  %s2031_s16 = smov 80   ;;  %vm870_vm2 = vcmask 523264   ;;  %s2035_s10 = smov 32   ;;  %vm2046_vm3 = vmmov 0  }
  0x60   : > { %473 = vperm.xlu1 %1842, %v329_v2   ;;  %413 = vperm.xlu0 %1840, %v329_v2   ;;  %v328_v11 = vld [vmem:[%s327_s11] sm:$0xff]  ;;  %s2034_s11 = smov 48   ;;  %s2036_s12 = smov 112   ;;  %vm669_vm4 = vcmask 31744   ;;  %vm1053_vm5 = vcmask 130080  }
  0x61   : > { %v2236_v22 = vsub.s32 0, %v2233_v19  ;;  %v2239_v23 = vsub.s32 1, %v2233_v19  ;;  %v1666_v39 = vld [vmem:[%s2633_s4 + $0x3] ss:$4 sm:$0x3]  ;;  %s2037_s8 = smov 92  }
  0x62   : > { %v2293_v0 = vld [vmem:[#allocation6 + $0x8] ss:$4 sm:$0x7f]  ;;  %s2038_s14 = smov 116   ;;  %s2039_s26 = smov 12  }
  0x63   : > { %v2251_v29 = vrot.slane %v330_v24, %v2236_v22  ;;  %v2254_v30 = vrot.slane %v330_v24, %v2239_v23  ;;  %v2257_v31 = vrot.slane %v1664_v25, %v2236_v22  ;;  %v2260_v32 = vrot.slane %v1664_v25, %v2239_v23  ;;  %s2040_s29 = smov 104   ;;  %s2041_s13 = smov 4  }
  0x64   : > { %1843 = vset.pattern.permute.xlu1 %v2016_v3  ;;  %1841 = vset.pattern.permute.xlu0 %v2017_v4  ;;  %v2263_v33 = vrot.slane %v1665_v26, %v2236_v22  ;;  %v2266_v34 = vrot.slane %v1665_v26, %v2239_v23  ;;  %v2276_v42 = vrot.slane %v1666_v39, %v2236_v22  ;;  %v2300_v4 = vsub.s32 2, %v2233_v19  ;;  %v2333_v26 = vld [vmem:[#allocation6 + $0x9] ss:$4 sm:$0x7f]  ;;  %s2042_s27 = smov 8   ;;  %p2665_p1 = scmp.ne.s32.totalorder %s2650_s30, 0 }
  0x65   : > { %479 = vperm.xlu1 %1843, %v329_v2   ;;  %419 = vperm.xlu0 %1841, %v329_v2   ;;  %v2279_v43 = vrot.slane %v1666_v39, %v2239_v23 }
  0x66   : > { %v730_v39 = vrot.slane %v2333_v26, %v2300_v4 }
  0x69   : > { %1844 = vset.pattern.permute.xlu1 %v2018_v5  ;;  %1845 = vset.pattern.permute.xlu0 %v2019_v6 }
  0x6a   : > { %427 = vperm.xlu1 %1844, %v329_v2   ;;  %487 = vperm.xlu0 %1845, %v329_v2  }
  0x6e   : > { %1846 = vset.pattern.permute.xlu1 %v2020_v7  ;;  %1850 = vset.pattern.permute.xlu0 %v2021_v8 }
  0x6f   : > { %435 = vperm.xlu1 %1846, %v329_v2   ;;  %449 = vperm.xlu0 %1850, %v329_v2  }
  0x73   : > { %1847 = vset.pattern.permute.xlu1 %v2022_v9  ;;  %1851 = vset.pattern.permute.xlu0 %v2023_v10  ;;  %v2304_v9 = vld [vmem:[#allocation6 + $0x20] ss:$4 sm:$0x7]  ;;  %v681_v10 = vrot.slane %v2293_v0, %v2239_v23 }
  0x74   : > { %495 = vperm.xlu1 %1847, %v329_v2   ;;  %333 = vperm.xlu0 %1851, %v329_v2   ;;  %v900_v18 = vrot.slane %v2304_v9, %v2236_v22 }
  0x78   : > { %1848 = vset.pattern.permute.xlu1 %v2024_v12  ;;  %505 = vperm.xlu0 %1851, %v328_v11  }
  0x79   : > { %352 = vperm.xlu1 %1848, %v329_v2  }
  0x7c   : > { %1856 = vset.pattern.permute.xlu0 %v2025_v13 }
  0x7d   : > { %1849 = vset.pattern.permute.xlu1 %v2026_v14  ;;  %465 = vperm.xlu0 %1856, %v329_v2  }
  0x7e   : > { %443 = vperm.xlu1 %1849, %v329_v2  }
  0x81   : > { %1858 = vset.pattern.permute.xlu0 %v2026_v14 }
  0x82   : > { %1852 = vset.pattern.permute.xlu1 %v2027_v15  ;;  %v908_v15 = vrot.slane %v2304_v9, %v2300_v4 }
  0x83   : > { %373 = vperm.xlu1 %1852, %v329_v2  }
  0x87   : > { %1853 = vset.pattern.permute.xlu1 %v2028_v16 }
  0x88   : > { %457 = vperm.xlu1 %1853, %v329_v2  }
  0x8c   : > { %1854 = vset.pattern.permute.xlu1 %v2015_v1  ;;  %v2296_v1 = vsub.s32 4, %v2233_v19 }
  0x8d   : > { %524 = vperm.xlu1 %1854, %v328_v11  }
  0x8e   : > { %v693_v13 = vrot.slane %v2293_v0, %v2296_v1 }
  0x91   : > { %1855 = vset.pattern.permute.xlu1 %v2029_v17 }
  0x92   : > { %394 = vperm.xlu1 %1855, %v329_v2  }
  0x96   : > { %1857 = vset.pattern.permute.xlu1 %v2026_v14  ;;  %v677_v14 = vrot.slane %v2293_v0, %v2236_v22 }
  0x97   : > { %545 = vperm.xlu1 %1857, %v328_v11  }
  0xdb   : > { %v474_v20 = vpop.permute.xlu1 %473  ;;  %v414_v21 = vpop.permute.xlu0 %413 }
  0xdc   : > { %v416_v35 = vmul.f32 %v414_v21, %v2251_v29  ;;  %v417_v36 = vmul.f32 %v414_v21, %v2254_v30  ;;  %v476_v56 = vmul.f32 %v474_v20, %v2251_v29  ;;  %v477_v57 = vmul.f32 %v474_v20, %v2254_v30 }
  0xe0   : > { %v480_v27 = vpop.permute.xlu1 %479  ;;  %v420_v28 = vpop.permute.xlu0 %419 }
  0xe1   : > { %v422_v37 = vmul.f32 %v420_v28, %v2257_v31  ;;  %v423_v38 = vmul.f32 %v420_v28, %v2260_v32  ;;  %v482_v48 = vmul.f32 %v480_v27, %v2257_v31  ;;  %v483_v49 = vmul.f32 %v480_v27, %v2260_v32  ;;  %v502_v27 = vld [vmem:[#allocation6] ss:$4 sm:$0x3] }
  0xe3   : > { %v424_v44 = vadd.f32 %v422_v37, %v416_v35  ;;  %v425_v45 = vadd.f32 %v423_v38, %v417_v36  ;;  %v484_v62 = vadd.f32 %v482_v48, %v476_v56  ;;  %v485_v63 = vadd.f32 %v483_v49, %v477_v57  ;;  %v2341_v37 = vld [vmem:[#allocation6 + $0x1] ss:$4 sm:$0x3] }
  0xe4   : > { %v2339_v36 = vsub.s32 3, %v2233_v19  ;;  %v685_v38 = vrot.slane %v2293_v0, %v2300_v4  ;;  %v516_v48 = vrot.slane %v502_v27, %v2239_v23  ;;  %v535_v49 = vrot.slane %v2341_v37, %v2239_v23 }
  0xe5   : > { %v428_v40 = vpop.permute.xlu1 %427  ;;  %v488_v41 = vpop.permute.xlu0 %487 }
  0xe6   : > { %v430_v46 = vmul.f32 %v428_v40, %v2263_v33  ;;  %v431_v47 = vmul.f32 %v428_v40, %v2266_v34  ;;  %v490_v58 = vmul.f32 %v488_v41, %v2263_v33  ;;  %v491_v59 = vmul.f32 %v488_v41, %v2266_v34  ;;  %2656 = vst [vmem:[#allocation13_spill] sm:$0xff] %v2339_v36 }
  0xe7   : > { %v2348_v40 = vsub.s32 5, %v2233_v19  ;;  %v2351_v41 = vsub.s32 6, %v2233_v19 }
  0xe8   : > { %v432_v52 = vadd.f32 %v430_v46, %v424_v44  ;;  %v433_v53 = vadd.f32 %v431_v47, %v425_v45  ;;  %v492_v5 = vadd.f32 %v490_v58, %v484_v62  ;;  %v493_v6 = vadd.f32 %v491_v59, %v485_v63 }
  0xe9   : > { %2657 = vst [vmem:[#allocation14_spill] sm:$0xff] %v2348_v40  ;;  %2658 = vst [vmem:[#allocation15_spill] sm:$0xff] %v2351_v41  ;;  %v512_v44 = vrot.slane %v502_v27, %v2236_v22  ;;  %v689_v46 = vrot.slane %v2293_v0, %v2339_v36  ;;  %v734_v47 = vrot.slane %v2333_v26, %v2339_v36  ;;  %v1667_v27 = vld [vmem:[#allocation6 + $0x8] ss:$0 sm:$0xff] }
  0xea   : > { %v436_v50 = vpop.permute.xlu1 %435  ;;  %v450_v51 = vpop.permute.xlu0 %449  ;;  %v697_v62 = vrot.slane %v2293_v0, %v2348_v40  ;;  %v701_v63 = vrot.slane %v2293_v0, %v2351_v41  ;;  %v904_v0 = vrot.slane %v2304_v9, %v2239_v23 }
  0xeb   : > { %v438_v54 = vmul.f32 %v436_v50, %v2276_v42  ;;  %v439_v55 = vmul.f32 %v436_v50, %v2279_v43  ;;  %v452_v19 = vmul.f32 %v450_v51, %v2257_v31 }
  0xed   : > { %v2291_v60 = vadd.f32 %v438_v54, %v432_v52  ;;  %v441_v61 = vadd.f32 %v439_v55, %v433_v53  ;;  %v453_v52 = vmul.f32 %v450_v51, %v2260_v32  ;;  %v2367_v55 = vld [vmem:[#allocation6 + $0xa] ss:$4 sm:$0x7f]  ;;  %v742_v51 = vrot.slane %v2333_v26, %v2348_v40  ;;  %v1671_v40 = vld [vmem:[#allocation6 + $0x29] ss:$0 sm:$0xff] }
  0xef   : > { %v496_v2 = vpop.permute.xlu1 %495  ;;  %608 = vrot.lane.b32.xlu1 %v2291_v60, %s2030_s15  ;;  %835 = vrot.lane.b32.xlu0 %v441_v61, %s2030_s15  ;;  %v334_v3 = vpop.permute.xlu0 %333  ;;  %v2373_v61 = vld [vmem:[#allocation6 + $0x21] ss:$4 sm:$0x7] }
  0xf0   : > { %v498_v7 = vmul.f32 %v496_v2, %v2276_v42  ;;  %v499_v8 = vmul.f32 %v496_v2, %v2279_v43  ;;  %v347_v53 = vmul.f32 %v2251_v29, %v334_v3  ;;  %v348_v54 = vmul.f32 %v2254_v30, %v334_v3 }
  0xf1   : > { %v722_v3 = vrot.slane %v2333_v26, %v2236_v22 }
  0xf2   : > { %v2308_v11 = vadd.f32 %v498_v7, %v492_v5  ;;  %v501_v12 = vadd.f32 %v499_v8, %v493_v6  ;;  %v925_v5 = vrot.slane %v2373_v61, %v2239_v23  ;;  %v929_v6 = vrot.slane %v2373_v61, %v2300_v4 }
  0xf3   : > { %v2317_v17 = vpop.permute.xlu0 %505 }
  0xf4   : > { %855 = vrot.lane.b32.xlu1 %v2308_v11, %s2030_s15  ;;  %857 = vrot.lane.b32.xlu0 %v501_v12, %s2030_s15  ;;  %v353_v16 = vpop.permute.xlu1 %352  ;;  %v2322_v20 = vmul.f32 %v681_v10, %v2317_v17  ;;  %v2325_v21 = vmul.f32 %v693_v13, %v2317_v17  ;;  %v2328_v24 = vmul.f32 %v677_v14, %v2317_v17  ;;  %s2043_s15 = smov 124  }
  0xf5   : > { %v2331_v25 = vmul.f32 %v908_v15, %v2317_v17  ;;  %v2336_v28 = vmul.f32 %v900_v18, %v2317_v17  ;;  %v366_v56 = vmul.f32 %v2257_v31, %v353_v16  ;;  %v367_v57 = vmul.f32 %v2260_v32, %v353_v16 }
  0xf6   : > { %v746_v31 = vrot.slane %v2333_v26, %v2351_v41  ;;  %v726_v32 = vrot.slane %v2333_v26, %v2239_v23  ;;  %v712_v2 = vmul.f32 %v689_v46, %v2317_v17  ;;  %v591_v46 = vmul.f32 %v1667_v27, %v2317_v17 }
  0xf7   : > { %v368_v12 = vadd.f32 %v366_v56, %v347_v53  ;;  %v369_v13 = vadd.f32 %v367_v57, %v348_v54  ;;  %v715_v53 = vmul.f32 %v701_v63, %v2317_v17  ;;  %v2661_v27 = vrot.slane %v2367_v55, %v2296_v1 }
  0xf8   : > { %v466_v9 = vpop.permute.xlu0 %465 }
  0xf9   : > { %v444_v35 = vpop.permute.xlu1 %443  ;;  %v468_v54 = vmul.f32 %v466_v9, %v2276_v42  ;;  %v469_v56 = vmul.f32 %v466_v9, %v2279_v43 }
  0xfa   : > { %v446_v58 = vmul.f32 %v444_v35, %v2251_v29  ;;  %v447_v59 = vmul.f32 %v444_v35, %v2254_v30  ;;  %v738_v30 = vrot.slane %v2333_v26, %v2296_v1  ;;  %v1670_v26 = vld [vmem:[#allocation6 + $0x28] ss:$0 sm:$0xff]  ;;  %v711_v35 = vmul.f32 %v685_v38, %v2317_v17 }
  0xfb   : > { %v1001_v38 = vmul.f32 %v1670_v26, %v2317_v17 }
  0xfc   : > { %v454_v8 = vadd.f32 %v452_v19, %v446_v58  ;;  %v455_v10 = vadd.f32 %v453_v52, %v447_v59  ;;  %v714_v19 = vmul.f32 %v697_v62, %v2317_v17  ;;  %v921_v52 = vrot.slane %v2373_v61, %v2236_v22 }
  0xfe   : > { %v374_v50 = vpop.permute.xlu1 %373 }
  0xff   : > { %v387_v14 = vmul.f32 %v2263_v33, %v374_v50  ;;  %v388_v15 = vmul.f32 %v2266_v34, %v374_v50  ;;  %v519_v50 = vmul.f32 %v512_v44, %v2317_v17 }
 0x101   : > { %v389_v58 = vadd.f32 %v387_v14, %v368_v12  ;;  %v390_v59 = vadd.f32 %v388_v15, %v369_v13 }
 0x103   : > { %v458_v7 = vpop.permute.xlu1 %457 }
 0x104   : > { %v460_v16 = vmul.f32 %v458_v7, %v2263_v33  ;;  %v461_v18 = vmul.f32 %v458_v7, %v2266_v34  ;;  %v520_v33 = vmul.f32 %v516_v48, %v2317_v17  ;;  %v913_v34 = vmul.f32 %v904_v0, %v2317_v17 }
 0x105   : > { %v2659_v0 = vrot.slane %v2341_v37, %v2236_v22 }
 0x106   : > { %v462_v61 = vadd.f32 %v460_v16, %v454_v8  ;;  %v463_v62 = vadd.f32 %v461_v18, %v455_v10  ;;  %v1668_v8 = vld [vmem:[#allocation6 + $0x9] ss:$0 sm:$0xff] }
 0x108   : > { %v525_v57 = vpop.permute.xlu1 %524 }
 0x109   : > { %v756_v63 = vmul.f32 %v730_v39, %v525_v57  ;;  %v757_v7 = vmul.f32 %v734_v47, %v525_v57  ;;  %v759_v44 = vmul.f32 %v742_v51, %v525_v57  ;;  %v760_v29 = vmul.f32 %v746_v31, %v525_v57 }
 0x10a   : > { %v755_v48 = vmul.f32 %v726_v32, %v525_v57  ;;  %v758_v45 = vmul.f32 %v738_v30, %v525_v57  ;;  %v538_v41 = vmul.f32 %v2659_v0, %v525_v57  ;;  %v539_v9 = vmul.f32 %v535_v49, %v525_v57 }
 0x10b   : > { %v763_v26 = vadd.f32 %v756_v63, %v711_v35  ;;  %v764_v36 = vadd.f32 %v757_v7, %v712_v2  ;;  %v2419_v17 = vadd.f32 %v759_v44, %v714_v19  ;;  %v2421_v12 = vadd.f32 %v760_v29, %v715_v53  ;;  %v2664_v63 = vld [vmem:[#allocation15_spill] sm:$0xff] }
 0x10c   : > { %v762_v39 = vadd.f32 %v755_v48, %v2322_v20  ;;  %v765_v47 = vadd.f32 %v758_v45, %v2325_v21  ;;  %v2425_v51 = vadd.f32 %v538_v41, %v519_v50  ;;  %v2427_v31 = vadd.f32 %v539_v9, %v520_v33 }
 0x10d   : > { %v395_v32 = vpop.permute.xlu1 %394  ;;  %v754_v37 = vmul.f32 %v722_v3, %v525_v57  ;;  %v934_v30 = vmul.f32 %v925_v5, %v525_v57  ;;  %v935_v49 = vmul.f32 %v929_v6, %v525_v57  ;;  %v1007_v10 = vmul.f32 %v1671_v40, %v525_v57  ;;  %v2439_v5 = vld [vmem:[#allocation6 + $0x22] ss:$4 sm:$0x7] }
 0x10e   : > { %v408_v2 = vmul.f32 %v2276_v42, %v395_v32  ;;  %v409_v13 = vmul.f32 %v2279_v43, %v395_v32  ;;  %v597_v29 = vmul.f32 %v1668_v8, %v525_v57  ;;  %v933_v14 = vmul.f32 %v921_v52, %v525_v57 }
 0x10f   : > { %v761_v15 = vadd.f32 %v754_v37, %v2328_v24  ;;  %v2432_v20 = vadd.f32 %v934_v30, %v913_v34  ;;  %v938_v21 = vadd.f32 %v935_v49, %v2331_v25  ;;  %v2435_v41 = vadd.f32 %v1007_v10, %v1001_v38 }
 0x110   : > { %v2437_v45 = vadd.f32 %v408_v2, %v389_v58  ;;  %v411_v3 = vadd.f32 %v409_v13, %v390_v59  ;;  %v2441_v40 = vadd.f32 %v597_v29, %v591_v46  ;;  %v936_v42 = vadd.f32 %v933_v14, %v2336_v28  ;;  %v2662_v46 = vld [vmem:[#allocation13_spill] sm:$0xff]  ;;  %v543_v2 = vld [vmem:[#allocation6 + $0x2] ss:$4 sm:$0x3] }
 0x111   : > { %v2444_v43 = vadd.f32 %v468_v54, %v462_v61  ;;  %v471_v6 = vadd.f32 %v469_v56, %v463_v62  ;;  %v774_v25 = vrot.slane %v2367_v55, %v2236_v22  ;;  %v953_v16 = vrot.slane %v2439_v5, %v2300_v4  ;;  %v2663_v61 = vld [vmem:[#allocation14_spill] sm:$0xff] }
 0x112   : > { %822 = vrot.lane.b32.xlu1 %v2437_v45, %s2031_s16  ;;  %824 = vrot.lane.b32.xlu0 %v411_v3, %s2031_s16  ;;  %v2449_v24 = vpop.permute.xlu1 %545  ;;  %v2660_v28 = vrot.slane %v2367_v55, %v2239_v23  ;;  %v945_v19 = vrot.slane %v2439_v5, %v2236_v22  ;;  %v782_v38 = vrot.slane %v2367_v55, %v2300_v4 }
 0x113   : > { %v810_v35 = vmul.f32 %v2661_v27, %v2449_v24  ;;  %v806_v50 = vmul.f32 %v774_v25, %v2449_v24  ;;  %v959_v33 = vmul.f32 %v953_v16, %v2449_v24  ;;  %v786_v57 = vrot.slane %v2367_v55, %v2662_v46 }
 0x114   : > { %v807_v18 = vmul.f32 %v2660_v28, %v2449_v24  ;;  %v957_v34 = vmul.f32 %v945_v19, %v2449_v24  ;;  %v808_v58 = vmul.f32 %v782_v38, %v2449_v24  ;;  %v794_v62 = vrot.slane %v2367_v55, %v2663_v61 }
 0x115   : > { %v817_v53 = vadd.f32 %v810_v35, %v765_v47  ;;  %v2471_v54 = vadd.f32 %v806_v50, %v761_v15  ;;  %v2473_v1 = vadd.f32 %v959_v33, %v938_v21  ;;  %v809_v59 = vmul.f32 %v786_v57, %v2449_v24 }
 0x116   : > { %845 = vrot.lane.b32.xlu0 %v471_v6, %s2031_s16  ;;  %843 = vrot.lane.b32.xlu1 %v2444_v43, %s2031_s16  ;;  %v814_v52 = vadd.f32 %v807_v18, %v762_v39  ;;  %v2479_v56 = vadd.f32 %v957_v34, %v936_v42  ;;  %v798_v7 = vrot.slane %v2367_v55, %v2664_v63 }
 0x117   : > { %v815_v44 = vadd.f32 %v808_v58, %v763_v26  ;;  %v816_v0 = vadd.f32 %v809_v59, %v764_v36  ;;  %v811_v4 = vmul.f32 %v794_v62, %v2449_v24  ;;  %v556_v13 = vrot.slane %v543_v2, %v2239_v23 }
 0x118   : > { %v812_v47 = vmul.f32 %v798_v7, %v2449_v24 }
 0x119   : > { %v818_v55 = vadd.f32 %v811_v4, %v2419_v17  ;;  %v552_v17 = vrot.slane %v543_v2, %v2236_v22  ;;  %v560_v42 = vmul.f32 %v556_v13, %v2449_v24 }
 0x11a   : > { %571 = vrot.lane.b32.xlu0 %v2308_v11, %s2032_s17  ;;  %565 = vrot.lane.b32.xlu1 %v2291_v60, %s2032_s17  ;;  %v819_v36 = vadd.f32 %v812_v47, %v2421_v12 }
 0x11b   : > { %v559_v3 = vmul.f32 %v552_v17, %v2449_v24  ;;  %v562_v35 = vadd.f32 %v560_v42, %v2427_v31  ;;  %v949_v31 = vrot.slane %v2439_v5, %v2239_v23 }
 0x11d   : > { %v561_v27 = vadd.f32 %v559_v3, %v2425_v51  ;;  %v958_v61 = vmul.f32 %v949_v31, %v2449_v24 }
 0x161   : > { %v2491_v48 = vpop.permute.xlu1 %608  ;;  %v836_v9 = vpop.permute.xlu0 %835 }
 0x162   : > { %v840_v8 = vmul.f32 %v815_v44, %v2491_v48  ;;  %v838_v39 = vsel %vm837_vm0, %v2491_v48, %v836_v9 }
 0x163   : > { %v841_v32 = vmul.f32 %v838_v39, %v816_v0 }
 0x164   : > { %866 = vrot.lane.b32.xlu1 %v840_v8, %s2032_s17  ;;  %v961_v8 = vadd.f32 %v958_v61, %v2432_v20 }
 0x165   : > { %868 = vrot.lane.b32.xlu0 %v841_v32, %s2032_s17 }
 0x166   : > { %v856_v26 = vpop.permute.xlu1 %855  ;;  %v858_v37 = vpop.permute.xlu0 %857 }
 0x167   : > { %v862_v30 = vmul.f32 %v856_v26, %v818_v55  ;;  %v859_v49 = vsel %vm837_vm0, %v856_v26, %v858_v37  ;;  %v1672_v26 = vld [vmem:[#allocation6 + $0x2a] ss:$0 sm:$0xff]  ;;  %v569_v37 = vmul.f32 %v562_v35, %v2444_v43 }
 0x168   : > { %v863_v10 = vmul.f32 %v859_v49, %v819_v36  ;;  %v1014_v20 = vmul.f32 %v1672_v26, %v2449_v24 }
 0x169   : > { %880 = vrot.lane.b32.xlu1 %v862_v30, %s2032_s17  ;;  %v563_v30 = vmul.f32 %v561_v27, %v2437_v45 }
 0x16a   : > { %882 = vrot.lane.b32.xlu0 %v863_v10, %s2032_s17 }
 0x16d   : > { %972 = vrot.lane.b32.xlu1 %v2308_v11, %s2033_s9 }
 0x184   : > { %v2509_v12 = vpop.permute.xlu1 %822  ;;  %v825_v29 = vpop.permute.xlu0 %824 }
 0x185   : > { %v827_v14 = vsel %vm826_vm1, %v2509_v12, %v825_v29  ;;  %v833_v15 = vmul.f32 %v825_v29, %v815_v44 }
 0x186   : > { %v832_v21 = vmul.f32 %v827_v14, %v814_v52  ;;  %v831_v52 = vmul.f32 %v2509_v12, %v2471_v54 }
 0x188   : > { %v844_v6 = vpop.permute.xlu1 %843  ;;  %v846_v25 = vpop.permute.xlu0 %845 }
 0x189   : > { %v851_v16 = vmul.f32 %v844_v6, %v816_v0  ;;  %v847_v28 = vsel %vm826_vm1, %v844_v6, %v846_v25  ;;  %v853_v22 = vmul.f32 %v846_v25, %v818_v55 }
 0x18a   : > { %v852_v18 = vmul.f32 %v847_v28, %v817_v53 }
 0x18c   : > { %v566_v19 = vpop.permute.xlu1 %565  ;;  %v572_v50 = vpop.permute.xlu0 %571 }
 0x18d   : > { %v568_v33 = vmul.f32 %v566_v19, %v561_v27  ;;  %v574_v34 = vmul.f32 %v572_v50, %v562_v35 }
 0x18f   : > { %576 = vrot.lane.b32.xlu0 %v568_v33, %s2032_s17  ;;  %581 = vrot.lane.b32.xlu1 %v574_v34, %s2032_s17 }
 0x193   : > { %617 = vrot.lane.b32.xlu0 %v2308_v11, %s2034_s11  ;;  %968 = vrot.lane.b32.xlu1 %v2444_v43, %s2034_s11  ;;  %s319_s11 = scalar_lea.vmem [#allocation9], %s1658_s20 }
 0x1d6   : > { %v867_v53 = vpop.permute.xlu1 %866 }
 0x1d7   : > { %v875_v51 = vadd.f32 %v867_v53, %v831_v52  ;;  %v869_v38 = vpop.permute.xlu0 %868 }
 0x1d8   : > { %v871_v46 = vsel %vm870_vm2, %v867_v53, %v869_v38  ;;  %v877_v62 = vadd.f32 %v869_v38, %v833_v15 }
 0x1d9   : > { %v876_v44 = vadd.f32 %v871_v46, %v832_v21 }
 0x1db   : > { %v881_v57 = vpop.permute.xlu1 %880 }
 0x1dc   : > { %v888_v58 = vadd.f32 %v881_v57, %v851_v16  ;;  %v883_v59 = vpop.permute.xlu0 %882 }
 0x1dd   : > { %v884_v63 = vsel %vm870_vm2, %v881_v57, %v883_v59  ;;  %v890_v7 = vadd.f32 %v883_v59, %v853_v22 }
 0x1de   : > { %v891_v0 = vadd.f32 %v888_v58, %v875_v51  ;;  %v889_v9 = vadd.f32 %v884_v63, %v852_v18 }
 0x1df   : > { %v893_v54 = vadd.f32 %v890_v7, %v877_v62  ;;  %v973_v5 = vpop.permute.xlu1 %972 }
 0x1e0   : > { %v892_v4 = vadd.f32 %v889_v9, %v876_v44  ;;  %v963_v39 = vadd.f32 %v2479_v56, %v891_v0  ;;  %v1669_v56 = vld [vmem:[#allocation6 + $0xa] ss:$0 sm:$0xff] }
 0x1e1   : > { %v965_v23 = vadd.f32 %v2473_v1, %v893_v54  ;;  %v1015_v1 = vadd.f32 %v1014_v20, %v2435_v41  ;;  %v604_v49 = vmul.f32 %v1669_v56, %v2449_v24 }
 0x1e2   : > { %v964_v47 = vadd.f32 %v961_v8, %v892_v4  ;;  %v966_v19 = vmul.f32 %v963_v39, %v2509_v12 }
 0x1e3   : > { %v976_v32 = vmul.f32 %v973_v5, %v965_v23  ;;  %v605_v29 = vadd.f32 %v604_v49, %v2441_v40 }
 0x1e4   : > { %v975_v55 = vmul.f32 %v973_v5, %v964_v47  ;;  %v967_v36 = vmul.f32 %v964_v47, %v2291_v60  ;;  %v1058_v5 = vld [vmem:[#allocation8 + $0x8] sm:$0xff] }
 0x1e5   : > { %986 = vrot.lane.b32.xlu1 %v976_v32, %s2031_s16  ;;  %v1057_v32 = vld [vmem:[#allocation8] sm:$0xff] }
 0x1e6   : > { %984 = vrot.lane.b32.xlu0 %v975_v55, %s2031_s16  ;;  %v1094_v26 = vand.u32 4294901760, %v1057_v32 }
 0x1ea   : > { %613 = vrot.lane.b32.xlu0 %v2444_v43, %s2035_s10 }
 0x1ee   : > { %978 = vrot.lane.b32.xlu0 %v967_v36, %s2031_s16  ;;  %s2044_s16 = smov 120   ;;  %v2045_v36 = vmov 0.0  }
 0x1ef   : > { %1702 = vmatprep.subr.mxu1 %v2045_v36  ;;  %1706 = vmatprep.mubr.msk.f32.mxu1 %vm2046_vm3, %v2045_v36 }
 0x1f0   : > { %1695 = vmatprep.subr.mxu0 %v2045_v36  ;;  %1699 = vmatprep.mubr.msk.f32.mxu0 %vm2046_vm3, %v2045_v36 }
 0x1f2   : > { %1017 = vrot.lane.b32.xlu0 %v1015_v1, %s2032_s17  ;;  %v1176_v1 = vsub.f32 %v1057_v32, %v1094_v26 }
 0x201   : > { %v582_v10 = vpop.permute.xlu1 %581  ;;  %v577_v2 = vpop.permute.xlu0 %576 }
 0x202   : > { %v584_v17 = vadd.f32 %v582_v10, %v569_v37  ;;  %v579_v13 = vadd.f32 %v577_v2, %v563_v30  ;;  %v1177_v37 = vand.u32 4294901760, %v1176_v1 }
 0x204   : > { %v585_v14 = vadd.f32 %v584_v17, %v579_v13  ;;  %v1178_v10 = vsub.f32 %v1176_v1, %v1177_v37 }
 0x205   : > { %v618_v21 = vpop.permute.xlu0 %617  ;;  %v969_v24 = vpop.permute.xlu1 %968 }
 0x206   : > { %v606_v15 = vadd.f32 %v605_v29, %v585_v14  ;;  %v971_v6 = vmul.f32 %v969_v24, %v964_v47  ;;  %v1091_v47 = vand.u32 4294901760, %v1058_v5  ;;  %v1179_v17 = vand.u32 4294901760, %v1178_v10 }
 0x208   : > { %v620_v3 = vmul.f32 %v618_v21, %v606_v15  ;;  %v611_v41 = vmul.f32 %v2491_v48, %v606_v15  ;;  %v2558_v55 = vsub.f32 %v1058_v5, %v1091_v47  ;;  %1696 = vmatpush3.msra.mxu0 %v1091_v47 }
 0x209   : > { %1697 = vmatprep.subr.mxu0 %v2045_v36 }
 0x20a   : > { %622 = vrot.lane.b32.xlu0 %v611_v41, %s2036_s12  ;;  %627 = vrot.lane.b32.xlu1 %v620_v3, %s2036_s12  ;;  %v1170_v20 = vand.u32 4294901760, %v2558_v55 }
 0x20b   : > { %1698 = vmatpush3.msra.mxu0 %v1094_v26 }
 0x20c   : > { %v1171_v56 = vsub.f32 %v2558_v55, %v1170_v20  ;;  %1709 = vmatprep.subr.mxu0 %v2045_v36 }
 0x20e   : > { %637 = vrot.lane.b32.xlu0 %v605_v29, %s2032_s17  ;;  %v1172_v49 = vand.u32 4294901760, %v1171_v56  ;;  %s2047_s17 = smov 52  }
 0x210   : > { %1703 = vmatpush3.msra.mxu1 %v1172_v49 }
 0x211   : > { %1704 = vmatprep.subr.mxu1 %v2045_v36 }
 0x212   : > { %1022 = vrot.lane.b32.xlu0 %v2291_v60, %s2037_s8  ;;  %1705 = vmatpush3.msra.mxu1 %v1179_v17 }
 0x213   : > { %1716 = vmatprep.subr.mxu1 %v2045_v36 }
 0x257   : > { %v987_v42 = vpop.permute.xlu1 %986 }
 0x258   : > { %v985_v25 = vpop.permute.xlu0 %984 }
 0x259   : > { %v988_v40 = vsel %vm826_vm1, %v985_v25, %v987_v42 }
 0x25a   : > { %v990_v16 = vadd.f32 %v988_v40, %v971_v6 }
 0x25c   : > { %992 = vrot.lane.b32.xlu1 %v990_v16, %s2035_s10  ;;  %v614_v48 = vpop.permute.xlu0 %613  ;;  %s1537_s10 = sshll.u32 %s319_s11, 4  ;;  %s1538_s10 = int_to_ptr.vmem [resolvable:$true] %s1537_s10 }
 0x25d   : > { %v616_v28 = vmul.f32 %v614_v48, %v606_v15 }
 0x260   : > { %1030 = vrot.lane.b32.xlu1 %v2308_v11, %s2038_s14  ;;  %v979_v27 = vpop.permute.xlu0 %978 }
 0x261   : > { %v981_v50 = vadd.f32 %v979_v27, %v966_v19 }
 0x264   : > { %v1018_v35 = vpop.permute.xlu0 %1017 }
 0x27c   : > { %v628_v22 = vpop.permute.xlu1 %627  ;;  %v623_v33 = vpop.permute.xlu0 %622 }
 0x27d   : > { %v630_v18 = vadd.f32 %v628_v22, %v616_v28 }
 0x27f   : > { %632 = vrot.lane.b32.xlu1 %v630_v18, %s2033_s9  ;;  %s1674_s9 = sshll.u32 %s2105_s25, 7 }
 0x280   : > { %v638_v31 = vpop.permute.xlu0 %637 }
 0x283   : > { %650 = vrot.lane.b32.xlu1 %v2308_v11, %s2039_s26  ;;  %s1524_s26 = scalar_lea.sflag [#allocation5], %s2202_s18 }
 0x284   : > { %v1023_v11 = vpop.permute.xlu0 %1022 }
 0x287   : > { %1026 = vrot.lane.b32.xlu1 %v2444_v43, %s2040_s29 }
 0x28b   : > { %642 = vrot.lane.b32.xlu1 %v2291_v60, %s2041_s13  ;;  %v607_v60 = vmul.f32 %v606_v15, %v2437_v45 }
 0x28d   : > { %v625_v57 = vadd.f32 %v623_v33, %v607_v60 }
 0x2ce   : > { %v993_v34 = vpop.permute.xlu1 %992 }
 0x2cf   : > { %v995_v52 = vadd.f32 %v993_v34, %v981_v50 }
 0x2d1   : > { %v1020_v53 = vadd.f32 %v1018_v35, %v995_v52 }
 0x2d2   : > { %v1031_v51 = vpop.permute.xlu1 %1030 }
 0x2d3   : > { %v1033_v38 = vmul.f32 %v1031_v51, %v1020_v53  ;;  %v1025_v46 = vmul.f32 %v1023_v11, %v1020_v53  ;;  %v1021_v2 = vmul.f32 %v1020_v53, %v2509_v12 }
 0x2d5   : > { %1040 = vrot.lane.b32.xlu0 %v1033_v38, %s2038_s14 }
 0x2d9   : > { %646 = vrot.lane.b32.xlu0 %v2444_v43, %s2042_s27 }
 0x2dd   : > { %1035 = vrot.lane.b32.xlu0 %v1025_v46, %s2038_s14  ;;  %v1055_v46 = vld [vmem:[%s2208_s3] sm:$0xff]  ;;  %s1535_s14 = scalar_lea.hbm %s2635_s6, %s1674_s9  ;;  %s2048_s3 = smov [#allocation9]  }
 0x2de   : > { %s1943_s25 = sshll.u32 %s2048_s3, 4  ;;  %s1944_s25 = int_to_ptr.vmem [resolvable:$false] %s1943_s25 }
 0x2df   : > { %s1945_s20 = scalar_lea.vmem %s1944_s25, 256  ;;  %p1946_p6 = scmp.lt.s32.totalorder %s1538_s10, %s1944_s25 }
 0x2f1   : > { %v633_v58 = vpop.permute.xlu1 %632 }
 0x2f2   : > { %v635_v59 = vadd.f32 %v633_v58, %v625_v57 }
 0x2f4   : > { %v640_v61 = vadd.f32 %v638_v31, %v635_v59 }
 0x2f5   : > { %v651_v62 = vpop.permute.xlu1 %650 }
 0x2f6   : > { %v653_v63 = vmul.f32 %v651_v62, %v640_v61  ;;  %v641_v21 = vmul.f32 %v640_v61, %v2437_v45 }
 0x2f8   : > { %660 = vrot.lane.b32.xlu1 %v653_v63, %s2043_s15 }
 0x2f9   : > { %v1027_v7 = vpop.permute.xlu1 %1026 }
 0x2fa   : > { %v1029_v44 = vmul.f32 %v1027_v7, %v1020_v53 }
 0x2fd   : > { %v643_v0 = vpop.permute.xlu1 %642 }
 0x2fe   : > { %v645_v9 = vmul.f32 %v643_v0, %v640_v61 }
 0x300   : > { %655 = vrot.lane.b32.xlu0 %v645_v9, %s2043_s15 }
 0x347   : > { %v1041_v54 = vpop.permute.xlu0 %1040 }
 0x348   : > { %v1043_v43 = vadd.f32 %v1041_v54, %v1029_v44 }
 0x34a   : > { %1045 = vrot.lane.b32.xlu1 %v1043_v43, %s2040_s29  ;;  %s1939_s29 = scalar_lea.vmem %s1538_s10, 128 }
 0x34b   : > { %v647_v4 = vpop.permute.xlu0 %646  ;;  %p1940_p0 = scmp.ne.s32.totalorder %s1538_s10, %s1939_s29  ;;  %p1947_p9 = scmp.lt.s32.totalorder %s1945_s20, %s1939_s29 }
 0x34c   : > { %v649_v8 = vmul.f32 %v647_v4, %v640_v61 }
 0x34d   : > { %p1941_p2 = pnand %p1940_p0, %p2665_p1  ;;  %p1948_p12 = por %p1947_p9, %p1946_p6 }
 0x34f   : > { %v1036_v30 = vpop.permute.xlu0 %1035  ;;  %p1942_p4 = pneg %p1941_p2 }
 0x350   : > { %v1038_v13 = vadd.f32 %v1036_v30, %v1021_v2 }
 0x351   : > { %p1949_p3 = pnand %p1948_p12, %p1942_p4 }
 0x36a   : > { %v661_v39 = vpop.permute.xlu1 %660 }
 0x36b   : > { %v663_v23 = vadd.f32 %v661_v39, %v649_v8 }
 0x36d   : > { %665 = vrot.lane.b32.xlu1 %v663_v23, %s2044_s16 }
 0x372   : > { %v656_v15 = vpop.permute.xlu0 %655 }
 0x373   : > { %v658_v3 = vadd.f32 %v656_v15, %v641_v21 }
 0x3bc   : > { %v1046_v29 = vpop.permute.xlu1 %1045 }
 0x3bd   : > { %v1048_v14 = vadd.f32 %v1046_v29, %v1038_v13 }
 0x3bf   : > { %1050 = vrot.lane.b32.xlu0 %v1048_v14, %s2047_s17 }
 0x3df   : > { %v666_v41 = vpop.permute.xlu1 %665 }
 0x3e0   : > { %v668_v24 = vadd.f32 %v666_v41, %v658_v3 }
 0x3e2   : > { %670 = vst.msk [vmem:[#allocation2] sm:$0xff] %vm669_vm4, %v668_v24 }
 0x431   : > { %v1051_v12 = vpop.permute.xlu0 %1050 }
 0x432   : > { %1054 = vst.msk [vmem:[#allocation2] sm:$0xff] %vm1053_vm5, %v1051_v12 }
 0x439   : > { %v1056_v42 = vld [vmem:[#allocation2] sm:$0xff] }
 0x43a   : > { %v1060_v6 = vsel %vm837_vm0, %v1056_v42, 0 }
 0x43b   : > { %v1129_v25 = vand.u32 4294901760, %v1060_v6 }
 0x43d   : > { %v1130_v40 = vsub.f32 %v1060_v6, %v1129_v25  ;;  %1707 = vmatmul.mubr.f32.vlgmr.msra.gmra.mxu1 %v1129_v25 }
 0x43e   : > { %1717 = vmatpush3.msra.mxu1 %v1091_v47  ;;  %1720 = vmatprep.mubr.msk.f32.mxu1 %vm2046_vm3, %v2045_v36 }
 0x43f   : > { %1718 = vmatprep.subr.mxu1 %v2045_v36  ;;  %v1131_v45 = vand.u32 4294901760, %v1130_v40 }
 0x440   : > { %1719 = vmatpush3.msra.mxu1 %v1094_v26 }
 0x441   : > { %1721 = vmatmul.mubr.f32.vlgmr.msra.gmra.mxu1 %v1131_v45  ;;  %1730 = vmatprep.subr.mxu1 %v2045_v36  ;;  %v1132_v16 = vsub.f32 %v1130_v40, %v1131_v45 }
 0x442   : > { %1731 = vmatpush3.msra.mxu1 %v1091_v47  ;;  %1734 = vmatprep.mubr.msk.f32.mxu1 %vm2046_vm3, %v2045_v36 }
 0x443   : > { %1732 = vmatprep.subr.mxu1 %v2045_v36  ;;  %v1133_v48 = vand.u32 4294901760, %v1132_v16 }
 0x444   : > { %1733 = vmatpush3.msra.mxu1 %v1094_v26 }
 0x445   : > { %1700 = vmatmul.mubr.f32.vlgmr.msra.gmra.mxu0 %v1133_v48  ;;  %1735 = vmatmul.mubr.f32.vlgmr.msra.gmra.mxu1 %v1129_v25 }
 0x446   : > { %1710 = vmatpush3.msra.mxu0 %v2558_v55  ;;  %1713 = vmatprep.mubr.msk.f32.mxu0 %vm2046_vm3, %v2045_v36 }
 0x447   : > { %1711 = vmatprep.subr.mxu0 %v2045_v36 }
 0x448   : > { %1712 = vmatpush3.msra.mxu0 %v1176_v1 }
 0x449   : > { %1723 = vmatprep.subr.mxu0 %v2045_v36  ;;  %1714 = vmatmul.mubr.f32.vlgmr.msra.gmra.mxu0 %v1130_v40 }
 0x44a   : > { %1724 = vmatpush3.msra.mxu0 %v1170_v20  ;;  %1727 = vmatprep.mubr.msk.f32.mxu0 %vm2046_vm3, %v2045_v36 }
 0x44b   : > { %1725 = vmatprep.subr.mxu0 %v2045_v36 }
 0x44c   : > { %1726 = vmatpush3.msra.mxu0 %v1177_v37 }
 0x44d   : > { %1728 = vmatmul.mubr.f32.vlgmr.msra.gmra.mxu0 %v1129_v25 }
 0x4fd   : > { %v1216_v28 = vpop.f32.mrf.mxu1 }
 0x4ff   : > { %v1708_v22 = vpop.f32.mrf.mxu1 }
 0x501   : > { %v1367_v18 = vpop.f32.mrf.mxu1 }
 0x503   : > { %v1722_v27 = vpop.f32.mrf.mxu1 }
 0x505   : > { %v1135_v35 = vpop.f32.mrf.mxu0  ;;  %v1517_v19 = vpop.f32.mrf.mxu1 }
 0x506   : > { %v1217_v34 = vadd.f32 %v1216_v28, %v1135_v35 }
 0x507   : > { %v1701_v50 = vpop.f32.mrf.mxu0  ;;  %v1736_v33 = vpop.f32.mrf.mxu1 }
 0x509   : > { %v1292_v52 = vpop.f32.mrf.mxu0 }
 0x50a   : > { %v1293_v53 = vadd.f32 %v1292_v52, %v1217_v34 }
 0x50b   : > { %v1715_v51 = vpop.f32.mrf.mxu0 }
 0x50c   : > { %v1368_v38 = vadd.f32 %v1367_v18, %v1293_v53 }
 0x50d   : > { %v1444_v31 = vpop.f32.mrf.mxu0 }
 0x50e   : > { %v1445_v11 = vadd.f32 %v1444_v31, %v1368_v38 }
 0x50f   : > { %v1729_v60 = vpop.f32.mrf.mxu0 }
 0x510   : > { %v1518_v57 = vadd.f32 %v1517_v19, %v1445_v11 }
 0x512   : > { %v1521_v58 = vadd.f32 %v1518_v57, %v1055_v46 }
 0x514   : > { %1522 = vst.msk [vmem:[%s319_s11] sm:$0xff] %vm837_vm0, %v1521_v58 }
 0x515   : > { %1952 = shalt.err (!%p1949_p3)
}
 0x516   : > { %s1953_s13 = scalar_lea.hbm %s1535_s14, 128  ;;  %s1957_s15 = scalar_lea.hbm %s2635_s6, 256 }
 0x517   : > { %p1954_p7 = scmp.ne.s32.totalorder %s1535_s14, %s1953_s13  ;;  %p1958_p11 = scmp.lt.s32.totalorder %s1535_s14, %s2635_s6 }
 0x518   : > { %p1959_p5 = scmp.lt.s32.totalorder %s1957_s15, %s1953_s13 }
 0x519   : > { %p1955_p10 = pnand %p1954_p7, %p2665_p1 }
 0x51a   : > { %p1960_p13 = por %p1959_p5, %p1958_p11 }
 0x51b   : > { %p1956_p8 = pneg %p1955_p10 }
 0x51d   : > { %p1961_p0 = pnand %p1960_p13, %p1956_p8 }
 0x51f   : > { %1964 = shalt.err (!%p1961_p0)
}
 0x520   : > { %1747 = dma.vmem_to_hbm [thread:$0]  (%p2665_p1), %s1538_s10, 128, %s1535_s14, %s1524_s26  }
 0x521 PF: > { %s1549_s9 = sand.u32 1, %s1995_s21   ;;  %p2666_p2 = scmp.ne.s32.totalorder %s2645_s28, 0 }
 0x522   : > { %p2667_p4 = scmp.ge.s32.totalorder %s2007_s24, 2  ;;  %s1550_s11 = scalar_lea.sflag [#allocation5], %s1549_s9 }
 0x524   : > { %p1761_p6 = pnand %p2667_p4, %p2666_p2 }
 0x526   : > { %p1762_p9 = pneg %p1761_p6 }
 0x528   : > { %1990 = dma.done.wait (%p1762_p9), %s1550_s11, 128  }
 0x529   : > { %1992 = vsyncadd (%p1762_p9), %s1550_s11, 4294967168  ;;  %p20_p12 = scmp.ge.s32.totalorder %s2156_s19, 4   ;;  %s2668_s21 = smov %s1999_s22 }
 0x52a   : > { %s2669_s22 = smov %s2003_s23  ;;  %s2670_s23 = smov %s2172_s7 }
 0x52b   : > { %s2671_s24 = smov %s2156_s19  ;;  %22 = sbr.rel (!%p20_p12) target bundleno = 8 (0x8), region = 114 }
 0x530   :  { %1555 = vsyncpa [#allocation4], 1 }
 0x531   :  { %1557 = vsyncpa [#allocation4 + $0x1], 1 }
 0x532   :  { %1558 = vsyncpa [#allocation7], 1 }
 0x533   :  { %1559 = vsyncpa [#allocation5], 1 }
 0x534   :  { %1561 = vsyncpa [#allocation5 + $0x1], 1 }

</bundles_post_ra>
